<compile_context>
chip_gen: v7x
topology: tpu7x:2x2x1
jax: 0.10.0
libtpu: 0.0.40
codegen_flags: <defaults>
</compile_context>

<pallas_src>
import jax
import jax.numpy as jnp
from jax.experimental import pallas as pl
from jax.experimental.pallas import tpu as pltpu

LANE = 128  # pad channel/class dims to full vreg lane width


def _round_up(n, m):
    return ((n + m - 1) // m) * m


def _pad_axis(a, axis, size):
    pad = [(0, 0)] * a.ndim
    pad[axis] = (0, size - a.shape[axis])
    return jnp.pad(a, pad)


# ------------------------------ fused kernel --------------------------------

def _make_ocr_kernel(H, W, Cin, CP, V, VP, with_decoder):
    """Fused conv3x3+bias+ReLU -> height-mean (-> CTC head) kernel body.

    Grid: one step per batch image. All intermediates stay in VMEM/vregs.
    """

    def kernel(*refs):
        if with_decoder:
            (xpad_ref, wconv_ref, bconv_ref, wdec_ref, bdec_ref,
             logits_ref, y_ref) = refs
        else:
            xpad_ref, wconv_ref, bconv_ref, xfeat_ref, y_ref = refs

        # ---- conv 3x3 "same": 9 shifted-slice matmuls, f32 accumulation ----
        # patches are generated in VMEM (no HBM im2col); MXU inputs are bf16.
        acc = jnp.zeros((H * W, CP), jnp.float32)
        for kh in range(3):
            for kw in range(3):
                xs = xpad_ref[0, kh:kh + H, kw:kw + W, :]          # (H, W, Cin)
                xs2 = xs.reshape(H * W, Cin).astype(jnp.bfloat16)  # (H*W, Cin)
                acc = acc + jnp.dot(xs2, wconv_ref[kh, kw],
                                    preferred_element_type=jnp.float32)

        feat = jnp.maximum(acc + bconv_ref[...], 0.0)              # (H*W, CP) f32

        # ---- y = mean over image height (sequence features) ----
        y = jnp.mean(feat.reshape(H, W, CP), axis=0)               # (W, CP)
        y_ref[...] = y[None]

        if with_decoder:
            # ---- CTC head: per-timestep linear + log_softmax (lane-padded V) ----
            z = jnp.dot(y.astype(jnp.bfloat16), wdec_ref[...],
                        preferred_element_type=jnp.float32) + bdec_ref[...]
            lane = jax.lax.broadcasted_iota(jnp.int32, (W, VP), 1)
            z = jnp.where(lane < V, z, jnp.float32(-1e30))         # mask pad classes
            m = jnp.max(z, axis=-1, keepdims=True)
            s = z - m
            lse = jnp.log(jnp.sum(jnp.exp(s), axis=-1, keepdims=True))
            logits_ref[...] = (s - lse)[None]
        else:
            # decoder=None path needs the full feature map back.
            xfeat_ref[...] = feat[None]

    return kernel


def _compiler_params():
    return pltpu.CompilerParams(
        dimension_semantics=("parallel",),          # shard batch across TCs
        vmem_limit_bytes=32 * 1024 * 1024,          # explicit, fits all gens
    )


def _encoder_call(xpad, wconv, bconv, B, H, W, Cin, CP):
    kernel = _make_ocr_kernel(H, W, Cin, CP, 0, 0, with_decoder=False)
    return pl.pallas_call(
        kernel,
        grid=(B,),
        in_specs=[
            pl.BlockSpec((1, H + 2, W + 2, Cin), lambda b: (b, 0, 0, 0)),
            pl.BlockSpec((3, 3, Cin, CP), lambda b: (0, 0, 0, 0)),
            pl.BlockSpec((1, CP), lambda b: (0, 0)),
        ],
        out_specs=(
            pl.BlockSpec((1, H * W, CP), lambda b: (b, 0, 0)),
            pl.BlockSpec((1, W, CP), lambda b: (b, 0, 0)),
        ),
        out_shape=(
            jax.ShapeDtypeStruct((B, H * W, CP), jnp.float32),
            jax.ShapeDtypeStruct((B, W, CP), jnp.float32),
        ),
        compiler_params=_compiler_params(),
    )(xpad, wconv, bconv)


def _full_call(xpad, wconv, bconv, wdec, bdec, B, H, W, Cin, CP, V, VP):
    kernel = _make_ocr_kernel(H, W, Cin, CP, V, VP, with_decoder=True)
    return pl.pallas_call(
        kernel,
        grid=(B,),
        in_specs=[
            pl.BlockSpec((1, H + 2, W + 2, Cin), lambda b: (b, 0, 0, 0)),
            pl.BlockSpec((3, 3, Cin, CP), lambda b: (0, 0, 0, 0)),
            pl.BlockSpec((1, CP), lambda b: (0, 0)),
            pl.BlockSpec((CP, VP), lambda b: (0, 0)),
            pl.BlockSpec((1, VP), lambda b: (0, 0)),
        ],
        out_specs=(
            pl.BlockSpec((1, W, VP), lambda b: (b, 0, 0)),
            pl.BlockSpec((1, W, CP), lambda b: (b, 0, 0)),
        ),
        out_shape=(
            jax.ShapeDtypeStruct((B, W, VP), jnp.float32),
            jax.ShapeDtypeStruct((B, W, CP), jnp.float32),
        ),
        compiler_params=_compiler_params(),
    )(xpad, wconv, bconv, wdec, bdec)


# ------------------------------- model wrapper -------------------------------

def ocr_model_forward(x, params, target=None, use_decoder=True):
    """Mirrors OCRModel.forward (encoder + optional CTC-head decoder)."""
    B, Cin, H, W = x.shape
    Cout = params["conv_w"].shape[0]
    CP = _round_up(Cout, LANE)

    # NCHW -> NHWC + spatial zero-pad for the 'same' 3x3 conv (cheap glue;
    # the 9x patch blowup now lives entirely in VMEM inside the kernel).
    x_nhwc = jnp.transpose(x, (0, 2, 3, 1)).astype(jnp.float32)
    xpad = jnp.pad(x_nhwc, ((0, 0), (1, 1), (1, 1), (0, 0)))

    # Conv weight OIHW -> (kh, kw, cin, cout), lane-pad cout to 128, bf16 for MXU.
    wconv = jnp.transpose(params["conv_w"], (2, 3, 1, 0))
    wconv = _pad_axis(wconv, 3, CP).astype(jnp.bfloat16)
    bconv = _pad_axis(params["conv_b"].reshape(1, -1), 1, CP).astype(jnp.float32)

    if not use_decoder:
        # decoder is None branch: return (x_feat, y)
        xfeat_p, y_p = _encoder_call(xpad, wconv, bconv, B, H, W, Cin, CP)
        # Present NCHW at the module boundary (PyTorch convention). A consumer
        # that accepts NHWC could skip this transpose entirely.
        x_feat = jnp.transpose(xfeat_p.reshape(B, H, W, CP)[..., :Cout],
                               (0, 3, 1, 2))
        return x_feat, y_p[..., :Cout]

    # CTCLSTM-family branch: return (decoder(x, y, target), y)
    # TODO(synk): `target` (CTC loss) and the LSTM recurrence are not implemented;
    # only the inference-style linear CTC head + log_softmax runs in the kernel.
    V = params["dec_w"].shape[1]
    VP = _round_up(V, LANE)
    wdec = _pad_axis(_pad_axis(params["dec_w"], 0, CP), 1, VP).astype(jnp.bfloat16)
    bdec = _pad_axis(params["dec_b"].reshape(1, -1), 1, VP).astype(jnp.float32)

    logits_p, y_p = _full_call(xpad, wconv, bconv, wdec, bdec,
                               B, H, W, Cin, CP, V, VP)
    return logits_p[..., :V], y_p[..., :Cout]


# ------------------------------ pure-JAX reference ---------------------------

def _reference_forward(x, params, use_decoder):
    out = jax.lax.conv_general_dilated(
        x, params["conv_w"], window_strides=(1, 1), padding="SAME",
        dimension_numbers=("NCHW", "OIHW", "NCHW"))
    out = out + params["conv_b"][None, :, None, None]
    out = jnp.maximum(out, 0.0)                              # (B, Cout, H, W)
    y = jnp.mean(out, axis=2).transpose(0, 2, 1)             # (B, W, Cout)
    if not use_decoder:
        return out, y
    z = y @ params["dec_w"] + params["dec_b"]
    return jax.nn.log_softmax(z, axis=-1), y


# ---------------------------------- main -------------------------------------

if __name__ == "__main__":
    key = jax.random.PRNGKey(0)
    kx, kw, kb, kdw, kdb = jax.random.split(key, 5)

    B, Cin, H, W = 2, 4, 16, 16
    Cout = 8
    num_classes = 32

    x = jax.random.normal(kx, (B, Cin, H, W), dtype=jnp.float32)
    params = {
        "conv_w": 0.1 * jax.random.normal(kw, (Cout, Cin, 3, 3), dtype=jnp.float32),
        "conv_b": 0.1 * jax.random.normal(kb, (Cout,), dtype=jnp.float32),
        "dec_w": 0.1 * jax.random.normal(kdw, (Cout, num_classes), dtype=jnp.float32),
        "dec_b": 0.1 * jax.random.normal(kdb, (num_classes,), dtype=jnp.float32),
    }

    # decoder=None path: (x_feat, y)
    x_feat, y = ocr_model_forward(x, params, use_decoder=False)
    # CTC-family decoder path: (decoder(x, y, target), y)
    dec_out, y2 = ocr_model_forward(x, params, use_decoder=True)
    jax.block_until_ready((x_feat, y, dec_out, y2))

    assert x_feat.shape == (B, Cout, H, W)
    assert y.shape == (B, W, Cout)
    assert dec_out.shape == (B, W, num_classes)
    assert y2.shape == (B, W, Cout)

    # numerical check vs. pure-JAX reference (bf16 MXU inputs -> loose tolerance)
    ref_feat, ref_y = _reference_forward(x, params, use_decoder=False)
    ref_dec, _ = _reference_forward(x, params, use_decoder=True)
    assert jnp.allclose(x_feat, ref_feat, atol=3e-2, rtol=3e-2)
    assert jnp.allclose(y, ref_y, atol=3e-2, rtol=3e-2)
    assert jnp.allclose(dec_out, ref_dec, atol=3e-2, rtol=3e-2)

    print("KERNEL_OK")
</pallas_src>

<mosaic_0001>
module attributes {stable_mosaic.version = 11 : i64} {
  func.func @kernel(%arg0: i32, %arg1: memref<1x18x18x4xf32, #tpu.memory_space<vmem>>, %arg2: memref<3x3x4x128xbf16, #tpu.memory_space<vmem>>, %arg3: memref<1x128xf32, #tpu.memory_space<vmem>>, %arg4: memref<1x256x128xf32, #tpu.memory_space<vmem>>, %arg5: memref<1x16x128xf32, #tpu.memory_space<vmem>>) attributes {dimension_semantics = [#tpu.dimension_semantics<parallel>], iteration_bounds = array<i64: 2>, scalar_prefetch = 0 : i64, scratch_operands = 0 : i64, tpu.core_type = #tpu.core_type<tc>, window_params = [{transform_indices = @transform_0, window_bounds = array<i64: 1, 18, 18, 4>}, {pipeline_mode = #tpu.pipeline_mode<synchronous>, transform_indices = @transform_1, window_bounds = array<i64: 3, 3, 4, 128>}, {pipeline_mode = #tpu.pipeline_mode<synchronous>, transform_indices = @transform_2, window_bounds = array<i64: 1, 128>}, {transform_indices = @transform_3, window_bounds = array<i64: 1, 256, 128>}, {transform_indices = @transform_4, window_bounds = array<i64: 1, 16, 128>}]} {
    %cst = arith.constant 0.000000e+00 : f32
    %0 = vector.broadcast %cst : f32 to vector<256x128xf32>
    %c0 = arith.constant 0 : index
    %c0_0 = arith.constant 0 : index
    %c0_1 = arith.constant 0 : index
    %c0_2 = arith.constant 0 : index
    %1 = vector.load %arg1[%c0, %c0_0, %c0_1, %c0_2] : memref<1x18x18x4xf32, #tpu.memory_space<vmem>>, vector<1x16x16x4xf32>
    %2 = vector.shape_cast %1 : vector<1x16x16x4xf32> to vector<16x16x4xf32>
    %3 = vector.shape_cast %2 : vector<16x16x4xf32> to vector<256x4xf32>
    %4 = arith.truncf %3 : vector<256x4xf32> to vector<256x4xbf16>
    %c0_3 = arith.constant 0 : index
    %c0_4 = arith.constant 0 : index
    %c0_5 = arith.constant 0 : index
    %c0_6 = arith.constant 0 : index
    %5 = vector.load %arg2[%c0_3, %c0_4, %c0_5, %c0_6] : memref<3x3x4x128xbf16, #tpu.memory_space<vmem>>, vector<1x1x4x128xbf16>
    %6 = vector.shape_cast %5 : vector<1x1x4x128xbf16> to vector<4x128xbf16>
    %cst_7 = arith.constant dense<0.000000e+00> : vector<256x128xf32>
    %7 = tpu.matmul %4, %6, %cst_7 {dimension_numbers = #tpu.dot_dimension_numbers<[1], [0], [0], [1], [0, 0, 1, 1], [], []>} : vector<256x4xbf16>, vector<4x128xbf16>, vector<256x128xf32> -> vector<256x128xf32>
    %8 = arith.addf %0, %7 : vector<256x128xf32>
    %c0_8 = arith.constant 0 : index
    %c0_9 = arith.constant 0 : index
    %c1 = arith.constant 1 : index
    %c0_10 = arith.constant 0 : index
    %9 = vector.load %arg1[%c0_8, %c0_9, %c1, %c0_10] : memref<1x18x18x4xf32, #tpu.memory_space<vmem>>, vector<1x16x16x4xf32>
    %10 = vector.shape_cast %9 : vector<1x16x16x4xf32> to vector<16x16x4xf32>
    %11 = vector.shape_cast %10 : vector<16x16x4xf32> to vector<256x4xf32>
    %12 = arith.truncf %11 : vector<256x4xf32> to vector<256x4xbf16>
    %c0_11 = arith.constant 0 : index
    %c1_12 = arith.constant 1 : index
    %c0_13 = arith.constant 0 : index
    %c0_14 = arith.constant 0 : index
    %13 = vector.load %arg2[%c0_11, %c1_12, %c0_13, %c0_14] : memref<3x3x4x128xbf16, #tpu.memory_space<vmem>>, vector<1x1x4x128xbf16>
    %14 = vector.shape_cast %13 : vector<1x1x4x128xbf16> to vector<4x128xbf16>
    %cst_15 = arith.constant dense<0.000000e+00> : vector<256x128xf32>
    %15 = tpu.matmul %12, %14, %cst_15 {dimension_numbers = #tpu.dot_dimension_numbers<[1], [0], [0], [1], [0, 0, 1, 1], [], []>} : vector<256x4xbf16>, vector<4x128xbf16>, vector<256x128xf32> -> vector<256x128xf32>
    %16 = arith.addf %8, %15 : vector<256x128xf32>
    %c0_16 = arith.constant 0 : index
    %c0_17 = arith.constant 0 : index
    %c2 = arith.constant 2 : index
    %c0_18 = arith.constant 0 : index
    %17 = vector.load %arg1[%c0_16, %c0_17, %c2, %c0_18] : memref<1x18x18x4xf32, #tpu.memory_space<vmem>>, vector<1x16x16x4xf32>
    %18 = vector.shape_cast %17 : vector<1x16x16x4xf32> to vector<16x16x4xf32>
    %19 = vector.shape_cast %18 : vector<16x16x4xf32> to vector<256x4xf32>
    %20 = arith.truncf %19 : vector<256x4xf32> to vector<256x4xbf16>
    %c0_19 = arith.constant 0 : index
    %c2_20 = arith.constant 2 : index
    %c0_21 = arith.constant 0 : index
    %c0_22 = arith.constant 0 : index
    %21 = vector.load %arg2[%c0_19, %c2_20, %c0_21, %c0_22] : memref<3x3x4x128xbf16, #tpu.memory_space<vmem>>, vector<1x1x4x128xbf16>
    %22 = vector.shape_cast %21 : vector<1x1x4x128xbf16> to vector<4x128xbf16>
    %cst_23 = arith.constant dense<0.000000e+00> : vector<256x128xf32>
    %23 = tpu.matmul %20, %22, %cst_23 {dimension_numbers = #tpu.dot_dimension_numbers<[1], [0], [0], [1], [0, 0, 1, 1], [], []>} : vector<256x4xbf16>, vector<4x128xbf16>, vector<256x128xf32> -> vector<256x128xf32>
    %24 = arith.addf %16, %23 : vector<256x128xf32>
    %c0_24 = arith.constant 0 : index
    %c1_25 = arith.constant 1 : index
    %c0_26 = arith.constant 0 : index
    %c0_27 = arith.constant 0 : index
    %25 = vector.load %arg1[%c0_24, %c1_25, %c0_26, %c0_27] : memref<1x18x18x4xf32, #tpu.memory_space<vmem>>, vector<1x16x16x4xf32>
    %26 = vector.shape_cast %25 : vector<1x16x16x4xf32> to vector<16x16x4xf32>
    %27 = vector.shape_cast %26 : vector<16x16x4xf32> to vector<256x4xf32>
    %28 = arith.truncf %27 : vector<256x4xf32> to vector<256x4xbf16>
    %c1_28 = arith.constant 1 : index
    %c0_29 = arith.constant 0 : index
    %c0_30 = arith.constant 0 : index
    %c0_31 = arith.constant 0 : index
    %29 = vector.load %arg2[%c1_28, %c0_29, %c0_30, %c0_31] : memref<3x3x4x128xbf16, #tpu.memory_space<vmem>>, vector<1x1x4x128xbf16>
    %30 = vector.shape_cast %29 : vector<1x1x4x128xbf16> to vector<4x128xbf16>
    %cst_32 = arith.constant dense<0.000000e+00> : vector<256x128xf32>
    %31 = tpu.matmul %28, %30, %cst_32 {dimension_numbers = #tpu.dot_dimension_numbers<[1], [0], [0], [1], [0, 0, 1, 1], [], []>} : vector<256x4xbf16>, vector<4x128xbf16>, vector<256x128xf32> -> vector<256x128xf32>
    %32 = arith.addf %24, %31 : vector<256x128xf32>
    %c0_33 = arith.constant 0 : index
    %c1_34 = arith.constant 1 : index
    %c1_35 = arith.constant 1 : index
    %c0_36 = arith.constant 0 : index
    %33 = vector.load %arg1[%c0_33, %c1_34, %c1_35, %c0_36] : memref<1x18x18x4xf32, #tpu.memory_space<vmem>>, vector<1x16x16x4xf32>
    %34 = vector.shape_cast %33 : vector<1x16x16x4xf32> to vector<16x16x4xf32>
    %35 = vector.shape_cast %34 : vector<16x16x4xf32> to vector<256x4xf32>
    %36 = arith.truncf %35 : vector<256x4xf32> to vector<256x4xbf16>
    %c1_37 = arith.constant 1 : index
    %c1_38 = arith.constant 1 : index
    %c0_39 = arith.constant 0 : index
    %c0_40 = arith.constant 0 : index
    %37 = vector.load %arg2[%c1_37, %c1_38, %c0_39, %c0_40] : memref<3x3x4x128xbf16, #tpu.memory_space<vmem>>, vector<1x1x4x128xbf16>
    %38 = vector.shape_cast %37 : vector<1x1x4x128xbf16> to vector<4x128xbf16>
    %cst_41 = arith.constant dense<0.000000e+00> : vector<256x128xf32>
    %39 = tpu.matmul %36, %38, %cst_41 {dimension_numbers = #tpu.dot_dimension_numbers<[1], [0], [0], [1], [0, 0, 1, 1], [], []>} : vector<256x4xbf16>, vector<4x128xbf16>, vector<256x128xf32> -> vector<256x128xf32>
    %40 = arith.addf %32, %39 : vector<256x128xf32>
    %c0_42 = arith.constant 0 : index
    %c1_43 = arith.constant 1 : index
    %c2_44 = arith.constant 2 : index
    %c0_45 = arith.constant 0 : index
    %41 = vector.load %arg1[%c0_42, %c1_43, %c2_44, %c0_45] : memref<1x18x18x4xf32, #tpu.memory_space<vmem>>, vector<1x16x16x4xf32>
    %42 = vector.shape_cast %41 : vector<1x16x16x4xf32> to vector<16x16x4xf32>
    %43 = vector.shape_cast %42 : vector<16x16x4xf32> to vector<256x4xf32>
    %44 = arith.truncf %43 : vector<256x4xf32> to vector<256x4xbf16>
    %c1_46 = arith.constant 1 : index
    %c2_47 = arith.constant 2 : index
    %c0_48 = arith.constant 0 : index
    %c0_49 = arith.constant 0 : index
    %45 = vector.load %arg2[%c1_46, %c2_47, %c0_48, %c0_49] : memref<3x3x4x128xbf16, #tpu.memory_space<vmem>>, vector<1x1x4x128xbf16>
    %46 = vector.shape_cast %45 : vector<1x1x4x128xbf16> to vector<4x128xbf16>
    %cst_50 = arith.constant dense<0.000000e+00> : vector<256x128xf32>
    %47 = tpu.matmul %44, %46, %cst_50 {dimension_numbers = #tpu.dot_dimension_numbers<[1], [0], [0], [1], [0, 0, 1, 1], [], []>} : vector<256x4xbf16>, vector<4x128xbf16>, vector<256x128xf32> -> vector<256x128xf32>
    %48 = arith.addf %40, %47 : vector<256x128xf32>
    %c0_51 = arith.constant 0 : index
    %c2_52 = arith.constant 2 : index
    %c0_53 = arith.constant 0 : index
    %c0_54 = arith.constant 0 : index
    %49 = vector.load %arg1[%c0_51, %c2_52, %c0_53, %c0_54] : memref<1x18x18x4xf32, #tpu.memory_space<vmem>>, vector<1x16x16x4xf32>
    %50 = vector.shape_cast %49 : vector<1x16x16x4xf32> to vector<16x16x4xf32>
    %51 = vector.shape_cast %50 : vector<16x16x4xf32> to vector<256x4xf32>
    %52 = arith.truncf %51 : vector<256x4xf32> to vector<256x4xbf16>
    %c2_55 = arith.constant 2 : index
    %c0_56 = arith.constant 0 : index
    %c0_57 = arith.constant 0 : index
    %c0_58 = arith.constant 0 : index
    %53 = vector.load %arg2[%c2_55, %c0_56, %c0_57, %c0_58] : memref<3x3x4x128xbf16, #tpu.memory_space<vmem>>, vector<1x1x4x128xbf16>
    %54 = vector.shape_cast %53 : vector<1x1x4x128xbf16> to vector<4x128xbf16>
    %cst_59 = arith.constant dense<0.000000e+00> : vector<256x128xf32>
    %55 = tpu.matmul %52, %54, %cst_59 {dimension_numbers = #tpu.dot_dimension_numbers<[1], [0], [0], [1], [0, 0, 1, 1], [], []>} : vector<256x4xbf16>, vector<4x128xbf16>, vector<256x128xf32> -> vector<256x128xf32>
    %56 = arith.addf %48, %55 : vector<256x128xf32>
    %c0_60 = arith.constant 0 : index
    %c2_61 = arith.constant 2 : index
    %c1_62 = arith.constant 1 : index
    %c0_63 = arith.constant 0 : index
    %57 = vector.load %arg1[%c0_60, %c2_61, %c1_62, %c0_63] : memref<1x18x18x4xf32, #tpu.memory_space<vmem>>, vector<1x16x16x4xf32>
    %58 = vector.shape_cast %57 : vector<1x16x16x4xf32> to vector<16x16x4xf32>
    %59 = vector.shape_cast %58 : vector<16x16x4xf32> to vector<256x4xf32>
    %60 = arith.truncf %59 : vector<256x4xf32> to vector<256x4xbf16>
    %c2_64 = arith.constant 2 : index
    %c1_65 = arith.constant 1 : index
    %c0_66 = arith.constant 0 : index
    %c0_67 = arith.constant 0 : index
    %61 = vector.load %arg2[%c2_64, %c1_65, %c0_66, %c0_67] : memref<3x3x4x128xbf16, #tpu.memory_space<vmem>>, vector<1x1x4x128xbf16>
    %62 = vector.shape_cast %61 : vector<1x1x4x128xbf16> to vector<4x128xbf16>
    %cst_68 = arith.constant dense<0.000000e+00> : vector<256x128xf32>
    %63 = tpu.matmul %60, %62, %cst_68 {dimension_numbers = #tpu.dot_dimension_numbers<[1], [0], [0], [1], [0, 0, 1, 1], [], []>} : vector<256x4xbf16>, vector<4x128xbf16>, vector<256x128xf32> -> vector<256x128xf32>
    %64 = arith.addf %56, %63 : vector<256x128xf32>
    %c0_69 = arith.constant 0 : index
    %c2_70 = arith.constant 2 : index
    %c2_71 = arith.constant 2 : index
    %c0_72 = arith.constant 0 : index
    %65 = vector.load %arg1[%c0_69, %c2_70, %c2_71, %c0_72] : memref<1x18x18x4xf32, #tpu.memory_space<vmem>>, vector<1x16x16x4xf32>
    %66 = vector.shape_cast %65 : vector<1x16x16x4xf32> to vector<16x16x4xf32>
    %67 = vector.shape_cast %66 : vector<16x16x4xf32> to vector<256x4xf32>
    %68 = arith.truncf %67 : vector<256x4xf32> to vector<256x4xbf16>
    %c2_73 = arith.constant 2 : index
    %c2_74 = arith.constant 2 : index
    %c0_75 = arith.constant 0 : index
    %c0_76 = arith.constant 0 : index
    %69 = vector.load %arg2[%c2_73, %c2_74, %c0_75, %c0_76] : memref<3x3x4x128xbf16, #tpu.memory_space<vmem>>, vector<1x1x4x128xbf16>
    %70 = vector.shape_cast %69 : vector<1x1x4x128xbf16> to vector<4x128xbf16>
    %cst_77 = arith.constant dense<0.000000e+00> : vector<256x128xf32>
    %71 = tpu.matmul %68, %70, %cst_77 {dimension_numbers = #tpu.dot_dimension_numbers<[1], [0], [0], [1], [0, 0, 1, 1], [], []>} : vector<256x4xbf16>, vector<4x128xbf16>, vector<256x128xf32> -> vector<256x128xf32>
    %72 = arith.addf %64, %71 : vector<256x128xf32>
    %c0_78 = arith.constant 0 : index
    %c0_79 = arith.constant 0 : index
    %73 = vector.load %arg3[%c0_78, %c0_79] : memref<1x128xf32, #tpu.memory_space<vmem>>, vector<1x128xf32>
    %74 = vector.broadcast %73 : vector<1x128xf32> to vector<256x128xf32>
    %75 = arith.addf %72, %74 : vector<256x128xf32>
    %cst_80 = arith.constant 0.000000e+00 : f32
    %76 = vector.broadcast %cst_80 : f32 to vector<256x128xf32>
    %77 = arith.maximumf %75, %76 : vector<256x128xf32>
    %78 = vector.shape_cast %77 : vector<256x128xf32> to vector<16x16x128xf32>
    %cst_81 = arith.constant dense<0.000000e+00> : vector<16x128xf32>
    %79 = vector.multi_reduction <add>, %78, %cst_81 [0] : vector<16x16x128xf32> to vector<16x128xf32>
    %cst_82 = arith.constant 1.600000e+01 : f32
    %80 = vector.broadcast %cst_82 : f32 to vector<16x128xf32>
    %81 = arith.divf %79, %80 : vector<16x128xf32>
    %82 = vector.shape_cast %81 : vector<16x128xf32> to vector<1x16x128xf32>
    %c0_83 = arith.constant 0 : index
    %c0_84 = arith.constant 0 : index
    %c0_85 = arith.constant 0 : index
    %83 = vector.load %arg5[%c0_83, %c0_84, %c0_85] : memref<1x16x128xf32, #tpu.memory_space<vmem>>, vector<1x16x128xf32>
    tpu.vector_store %arg5[%c0_83, %c0_84, %c0_85], %82 {strides = array<i32>} : memref<1x16x128xf32, #tpu.memory_space<vmem>>, vector<1x16x128xf32>,
    %84 = vector.shape_cast %77 : vector<256x128xf32> to vector<1x256x128xf32>
    %c0_86 = arith.constant 0 : index
    %c0_87 = arith.constant 0 : index
    %c0_88 = arith.constant 0 : index
    %85 = vector.load %arg4[%c0_86, %c0_87, %c0_88] : memref<1x256x128xf32, #tpu.memory_space<vmem>>, vector<1x256x128xf32>
    tpu.vector_store %arg4[%c0_86, %c0_87, %c0_88], %84 {strides = array<i32>} : memref<1x256x128xf32, #tpu.memory_space<vmem>>, vector<1x256x128xf32>,
    return
  }
  func.func @transform_0(%arg0: i32) -> (i32, i32, i32, i32) {
    %c0_i32 = arith.constant 0 : i32
    %c0_i32_0 = arith.constant 0 : i32
    %c0_i32_1 = arith.constant 0 : i32
    %c0_i32_2 = arith.constant 0 : i32
    return %arg0, %c0_i32, %c0_i32_0, %c0_i32_1 : i32, i32, i32, i32
  }
  func.func @transform_1(%arg0: i32) -> (i32, i32, i32, i32) {
    %c0_i32 = arith.constant 0 : i32
    %c0_i32_0 = arith.constant 0 : i32
    %c0_i32_1 = arith.constant 0 : i32
    %c0_i32_2 = arith.constant 0 : i32
    %c0_i32_3 = arith.constant 0 : i32
    return %c0_i32, %c0_i32_0, %c0_i32_1, %c0_i32_2 : i32, i32, i32, i32
  }
  func.func @transform_2(%arg0: i32) -> (i32, i32) {
    %c0_i32 = arith.constant 0 : i32
    %c0_i32_0 = arith.constant 0 : i32
    %c0_i32_1 = arith.constant 0 : i32
    return %c0_i32, %c0_i32_0 : i32, i32
  }
  func.func @transform_3(%arg0: i32) -> (i32, i32, i32) {
    %c0_i32 = arith.constant 0 : i32
    %c0_i32_0 = arith.constant 0 : i32
    %c0_i32_1 = arith.constant 0 : i32
    return %arg0, %c0_i32, %c0_i32_0 : i32, i32, i32
  }
  func.func @transform_4(%arg0: i32) -> (i32, i32, i32) {
    %c0_i32 = arith.constant 0 : i32
    %c0_i32_0 = arith.constant 0 : i32
    %c0_i32_1 = arith.constant 0 : i32
    return %arg0, %c0_i32, %c0_i32_0 : i32, i32, i32
  }
}

</mosaic_0001>

<bundles_post_ra>
// kernel: tpu_custom_call.1
= control target key start
LH: loop header
LB: loop body
LE: loop exit
PB: predicated region body
PF: predicated region fallthrough
CT: control target
= control target key end

     0   :  { %10 = vsyncpa [#allocation3], 0  ;;  %s5109_s0 = inlined_call_operand.vmem [shape: f32[2,18,18,4], index: 0, kind: input, shape index: {}]   ;;  %s5110_s1 = inlined_call_operand.vmem [shape: bf16[3,3,4,128], index: 1, kind: input, shape index: {}]   ;;  %s5111_s2 = inlined_call_operand.vmem [shape: f32[1,128], index: 2, kind: input, shape index: {}]   ;;  %s5112_s3 = inlined_call_operand.hbm [shape: f32[2,256,128], index: 3, kind: output, shape index: {0}]   ;;  %s5113_s4 = inlined_call_operand.hbm [shape: f32[2,16,128], index: 4, kind: output, shape index: {1}]  }
   0x1   :  { %12 = vsyncpa [#allocation3 + $0x1], 0 }
   0x2   :  { %13 = vsyncpa [#allocation5], 0 }
   0x3   :  { %15 = vsyncpa [#allocation5 + $0x1], 0  ;;  %s4321_s15 = smov 0   ;;  %s4323_s16 = smov 0  }
   0x4   :  { %s4325_s17 = smov 0   ;;  %s4327_s18 = smov 0  }
   0x5 LB: > { %s4342_s19 = sadd.s32 4294967295, %s4290_s18   ;;  %s3060_s20 = sadd.s32 4294967294, %s4290_s18   ;;  %s4290_s18 = sphi %s4327_s18, %s5119_s18   ;;  %s4286_s17 = sphi %s4325_s17, %s5118_s17   ;;  %s4282_s16 = sphi %s4323_s16, %s5117_s16   ;;  %s4278_s15 = sphi %s4321_s15, %s5116_s15  }
   0x6   : > { %s4346_s21 = sadd.s32 1, %s4290_s18   ;;  %s96_s22 = sadd.s32 1, %s4286_s17 }
   0x7   : > { %s93_s23 = ssub.s32 %s4290_s18, %s4346_s21  ;;  %p106_p0 = scmp.ne.s32.totalorder %s4286_s17, %s4282_s16 }
   0x8   : > { %p94_p1 = scmp.eq.s32.totalorder %s93_s23, 0  ;;  %p107_p2 = scmp.eq.s32.totalorder %s4342_s19, 1 }
   0x9   : > { %p112_p3 = scmp.ne.s32.totalorder %s4282_s16, %s4278_s15  ;;  %p113_p4 = scmp.eq.s32.totalorder %s3060_s20, 1 }
   0xa   : > { %s4357_s24 = scalar_select %p94_p1, %s4286_s17, %s96_s22  }
   0xb   : > { %p4359_p5 = por %p107_p2, %p106_p0  ;;  %p4363_p6 = por %p113_p4, %p112_p3 }
   0xc   : > { %p3063_p7 = scmp.ge.s32.totalorder %s4290_s18, 1  ;;  %p171_p8 = scmp.lt.s32.totalorder %s4290_s18, 3 }
   0xe   : > { %p172_p9 = pnand %p3063_p7, %p171_p8 }
   0xf   : > { %v3067_v0 = vld [vmem:[%s5110_s1 + $0x2] sm:$0x3] (!%p172_p9)  ;;  %vm356_vm0 = vcmask (!%p172_p9), 1041408   ;;  %v4375_v1 = vld [vmem:[%s5110_s1 + $0x8] sm:$0x3] (!%p172_p9)  ;;  %p202_p10 = scmp.lt.s32.totalorder (!%p172_p9), %s4342_s19, 1 }
  0x10   : > { %175 = sbr.rel (%p172_p9) target bundleno = 572 (0x23c), region = 32  ;;  %4139 = vmatprep.subr.msk.bf16.mxu1 (!%p172_p9), %vm356_vm0, %v3067_v0  ;;  %4143 = vmatprep.subr.msk.bf16.mxu0 (!%p172_p9), %vm356_vm0, %v4375_v1  ;;  %v358_v2 = vsel (!%p172_p9), %vm356_vm0, %v3067_v0, 0  ;;  %v4384_v3 = vsel (!%p172_p9), %vm356_vm0, %v4375_v1, 0  ;;  %v256_v4 = vld [vmem:[%s5110_s1] sm:$0x3] (!%p172_p9)  ;;  %vm307_vm1 = vcmask (!%p172_p9), 31744  }
  0x11   : > { %3576 = vmatpush3.bf16.msra.mxu1 (!%p172_p9), %v358_v2  ;;  %3712 = vmatpush3.bf16.msra.mxu0 (!%p172_p9), %v4384_v3  ;;  %v3247_v5 = vld [vmem:[%s5110_s1 + $0xa] sm:$0x3] (!%p172_p9)  ;;  %v570_v14 = vsel (!%p172_p9), %vm356_vm0, %v256_v4, 0  ;;  %v3296_v20 = vld [vmem:[%s5110_s1 + $0xc] sm:$0x3] (!%p172_p9)  ;;  %s3421_s27 = sshll.u32 (!%p172_p9), %s4342_s19, 8 }
  0x12   : > { %4140 = vmatprep.subr.msk.bf16.mxu1 (!%p172_p9), %vm356_vm0, %v256_v4  ;;  %4145 = vmatprep.subr.msk.bf16.mxu0 (!%p172_p9), %vm356_vm0, %v3247_v5  ;;  %v1715_v18 = vsel (!%p172_p9), %vm356_vm0, %v3247_v5, 0  ;;  %v4426_v21 = vld [vmem:[%s5110_s1 + $0x4] sm:$0x3] (!%p172_p9)  ;;  %v2010_v52 = vsel (!%p172_p9), %vm356_vm0, %v3296_v20, 0  ;;  %v4505_v53 = vld [vmem:[%s5110_s1 + $0xe] sm:$0x3] (!%p172_p9) }
  0x13   : > { %s4292_s6 = smov (!%p172_p9), [#allocation2]  }
  0x14   : > { %s4200_s8 = sshll.u32 (!%p172_p9), %s4292_s6, 4  ;;  %s4201_s8 = int_to_ptr.vmem [resolvable:$false] %s4200_s8 }
  0x15   : > { %s4202_s9 = scalar_lea.vmem (!%p172_p9), %s4201_s8, 8192 }
  0x17   : > { %s203_s7 = scalar_select %p202_p10, %s4342_s19, 1 }
  0x19   : > { %s4149_s10 = smul.u32 432, %s203_s7  ;;  %s4932_s7 = sand.u32 1, %s4282_s16  }
  0x1a   : > { %s3065_s12 = sshll.u32 %s4932_s7, 4  ;;  %s2932_s30 = scalar_lea.sflag [#allocation3], %s4932_s7 }
  0x1b   : > { %s4399_s13 = scalar_lea.vmem %s5109_s0, %s4149_s10  ;;  %s3064_s10 = sshll.u32 %s4932_s7, 8 }
  0x1c   : > { %v257_v6 = vld [vmem:[%s4399_s13 + $0x1] sm:$0xff]  ;;  %v258_v7 = vld [vmem:[%s4399_s13 + $0x9] sm:$0xff]  ;;  %v3166_v8 = vld [vmem:[%s4399_s13 + $0x19] sm:$0xff]  ;;  %s4944_s11 = scalar_lea.vmem [#allocation2], %s3064_s10  ;;  %s5022_s28 = scalar_lea.vmem [#allocation4], %s3065_s12 }
  0x1d   : > { %v289_v9 = vpack.c.bf16 %v258_v7, %v257_v6  ;;  %v3167_v10 = vld [vmem:[%s4399_s13 + $0x21] sm:$0xff]  ;;  %v3168_v11 = vld [vmem:[%s4399_s13 + $0x31] sm:$0xff]  ;;  %v3169_v12 = vld [vmem:[%s4399_s13 + $0x39] sm:$0xff]  ;;  %s2950_s14 = sshll.u32 %s4944_s11, 4  ;;  %s2966_s29 = sshll.u32 %s5022_s28, 4  ;;  %s5016_s14 = int_to_ptr.vmem [resolvable:$true] %s2950_s14  ;;  %s5062_s29 = int_to_ptr.vmem [resolvable:$true] %s2966_s29 }
  0x1e   : > { %v1354_v13 = vpack.c.bf16 %v3167_v10, %v3166_v8  ;;  %v4408_v15 = vpack.c.bf16 %v3169_v12, %v3168_v11  ;;  %v3170_v16 = vld [vmem:[%s4399_s13 + $0x49] sm:$0xff]  ;;  %v3171_v17 = vld [vmem:[%s4399_s13 + $0x51] sm:$0xff]  ;;  %v3172_v22 = vld [vmem:[%s4399_s13 + $0x61] sm:$0xff]  ;;  %s4196_s5 = scalar_lea.vmem %s5016_s14, 4096  ;;  %p4203_p0 = scmp.lt.s32.totalorder %s5016_s14, %s4201_s8 }
  0x1f   : > { %3577 = vmatprep.mubr.msk.bf16.mxu1 %vm307_vm1, %v289_v9  ;;  %v4414_v19 = vpack.c.bf16 %v3171_v17, %v3170_v16  ;;  %v3173_v23 = vld [vmem:[%s4399_s13 + $0x69] sm:$0xff]  ;;  %v3174_v24 = vld [vmem:[%s4399_s13 + $0x79] sm:$0xff]  ;;  %v3175_v25 = vld [vmem:[%s4399_s13 + $0x81] sm:$0xff]  ;;  %p4197_p11 = scmp.ne.s32.totalorder %s5016_s14, %s4196_s5  ;;  %p4204_p1 = scmp.lt.s32.totalorder %s4202_s9, %s4196_s5 }
  0x20   : > { %3713 = vmatprep.mubr.msk.bf16.mxu0 %vm307_vm1, %v1354_v13  ;;  %3578 = vmatmul.mubr.msk.bf16.vlgmr.msra.gmra.mrb[0].mxu1 %vm307_vm1, %v1354_v13  ;;  %v4439_v26 = vpack.c.bf16 %v3173_v23, %v3172_v22  ;;  %v4441_v27 = vpack.c.bf16 %v3175_v25, %v3174_v24  ;;  %v3176_v28 = vld [vmem:[%s4399_s13 + $0x91] sm:$0xff]  ;;  %v3177_v29 = vld [vmem:[%s4399_s13 + $0x99] sm:$0xff]  ;;  %v3178_v30 = vld [vmem:[%s4399_s13 + $0xa9] sm:$0xff] }
  0x21   : > { %3610 = vmatpush3.bf16.msra.mxu1 %v570_v14  ;;  %3714 = vmatmul.mubr.msk.bf16.vlgmr.msra.gmra.mrb[0].mxu0 %vm307_vm1, %v4408_v15  ;;  %v3179_v31 = vld [vmem:[%s4399_s13 + $0xb1] sm:$0xff]  ;;  %v4455_v32 = vpack.c.bf16 %v3177_v29, %v3176_v28  ;;  %v3180_v34 = vld [vmem:[%s4399_s13 + $0xc1] sm:$0xff]  ;;  %v3181_v35 = vld [vmem:[%s4399_s13 + $0xc9] sm:$0xff]  ;;  %p4198_p12 = pnand %p4197_p11, %p4359_p5  ;;  %p4205_p2 = por %p4204_p1, %p4203_p0 }
  0x22   : > { %3746 = vmatpush3.bf16.msra.mxu0 %v1715_v18  ;;  %3581 = vmatprep.mubr.msk.bf16.mxu1 %vm307_vm1, %v4408_v15  ;;  %v4457_v33 = vpack.c.bf16 %v3179_v31, %v3178_v30  ;;  %v3215_v36 = vld [vmem:[%s4399_s13 + $0x1a] sm:$0xff]  ;;  %v3216_v37 = vld [vmem:[%s4399_s13 + $0x22] sm:$0xff]  ;;  %v4471_v38 = vpack.c.bf16 %v3181_v35, %v3180_v34  ;;  %v3217_v42 = vld [vmem:[%s4399_s13 + $0x32] sm:$0xff] }
  0x23   : > { %3717 = vmatprep.mubr.msk.bf16.mxu0 %vm307_vm1, %v4414_v19  ;;  %4146 = vmatprep.subr.msk.bf16.mxu0 %vm356_vm0, %v3296_v20  ;;  %v4473_v39 = vpack.c.bf16 %v3216_v37, %v3215_v36  ;;  %v275_v40 = vld [vmem:[%s4399_s13 + $0xd9] sm:$0xff]  ;;  %v276_v41 = vld [vmem:[%s4399_s13 + $0xe1] sm:$0xff]  ;;  %v277_v44 = vld [vmem:[%s4399_s13 + $0xf1] sm:$0xff]  ;;  %p4199_p13 = pneg %p4198_p12 }
  0x24   : > { %4141 = vmatprep.subr.msk.bf16.mxu1 %vm356_vm0, %v4426_v21  ;;  %v3218_v43 = vld [vmem:[%s4399_s13 + $0x3a] sm:$0xff]  ;;  %v3219_v46 = vld [vmem:[%s4399_s13 + $0x4a] sm:$0xff]  ;;  %v3220_v47 = vld [vmem:[%s4399_s13 + $0x52] sm:$0xff]  ;;  %v4491_v48 = vpack.c.bf16 %v276_v41, %v275_v40 }
  0x25   : > { %v278_v45 = vld [vmem:[%s4399_s13 + $0xf9] sm:$0xff]  ;;  %v4493_v49 = vpack.c.bf16 %v3218_v43, %v3217_v42  ;;  %v4497_v51 = vpack.c.bf16 %v3220_v47, %v3219_v46  ;;  %v279_v54 = vld [vmem:[%s4399_s13 + $0x109] sm:$0xff]  ;;  %v280_v55 = vld [vmem:[%s4399_s13 + $0x111] sm:$0xff]  ;;  %v832_v47 = vsel %vm356_vm0, %v4426_v21, 0  ;;  %p4206_p3 = pnand %p4205_p2, %p4199_p13 }
  0x26   : > { %v4495_v50 = vpack.c.bf16 %v278_v45, %v277_v44  ;;  %v3221_v56 = vld [vmem:[%s4399_s13 + $0x62] sm:$0xff]  ;;  %v3222_v57 = vld [vmem:[%s4399_s13 + $0x6a] sm:$0xff]  ;;  %v3223_v60 = vld [vmem:[%s4399_s13 + $0x7a] sm:$0xff]  ;;  %v4523_v62 = vpack.c.bf16 %v280_v55, %v279_v54 }
  0x27   : > { %v281_v58 = vld [vmem:[%s4399_s13 + $0x121] sm:$0xff]  ;;  %v282_v59 = vld [vmem:[%s4399_s13 + $0x129] sm:$0xff]  ;;  %v4525_v63 = vpack.c.bf16 %v3222_v57, %v3221_v56  ;;  %v283_v4 = vld [vmem:[%s4399_s13 + $0x139] sm:$0xff] }
  0x28   : > { %3582 = vmatmul.mubr.msk.bf16.gmra.mrb[4].mxu1 %vm307_vm1, %v4414_v19  ;;  %v3224_v61 = vld [vmem:[%s4399_s13 + $0x82] sm:$0xff]  ;;  %v4527_v0 = vpack.c.bf16 %v282_v59, %v281_v58  ;;  %v3225_v6 = vld [vmem:[%s4399_s13 + $0x92] sm:$0xff]  ;;  %v3226_v7 = vld [vmem:[%s4399_s13 + $0x9a] sm:$0xff] }
  0x29   : > { %3718 = vmatmul.mubr.msk.bf16.gmra.mrb[4].mxu0 %vm307_vm1, %v4439_v26  ;;  %3585 = vmatprep.mubr.msk.bf16.mxu1 %vm307_vm1, %v4439_v26  ;;  %v4529_v2 = vpack.c.bf16 %v3224_v61, %v3223_v60  ;;  %v284_v5 = vld [vmem:[%s4399_s13 + $0x141] sm:$0xff]  ;;  %v285_v8 = vld [vmem:[%s4399_s13 + $0x151] sm:$0xff]  ;;  %v286_v9 = vld [vmem:[%s4399_s13 + $0x159] sm:$0xff]  ;;  %v4549_v13 = vpack.c.bf16 %v3226_v7, %v3225_v6 }
  0x2a   : > { %3721 = vmatprep.mubr.msk.bf16.mxu0 %vm307_vm1, %v4441_v27  ;;  %v3227_v10 = vld [vmem:[%s4399_s13 + $0xaa] sm:$0xff]  ;;  %v3228_v11 = vld [vmem:[%s4399_s13 + $0xb2] sm:$0xff]  ;;  %v4547_v12 = vpack.c.bf16 %v284_v5, %v283_v4  ;;  %v4551_v14 = vpack.c.bf16 %v286_v9, %v285_v8  ;;  %v3229_v20 = vld [vmem:[%s4399_s13 + $0xc2] sm:$0xff] }
  0x2b   : > { %v4553_v16 = vpack.c.bf16 %v3228_v11, %v3227_v10  ;;  %v287_v17 = vld [vmem:[%s4399_s13 + $0x169] sm:$0xff]  ;;  %v288_v18 = vld [vmem:[%s4399_s13 + $0x171] sm:$0xff]  ;;  %v208_v23 = vld [vmem:[%s4399_s13] sm:$0xff] }
  0x2c   : > { %v3230_v22 = vld [vmem:[%s4399_s13 + $0xca] sm:$0xff]  ;;  %v3231_v25 = vld [vmem:[%s4399_s13 + $0xda] sm:$0xff]  ;;  %v3232_v28 = vld [vmem:[%s4399_s13 + $0xe2] sm:$0xff]  ;;  %v4571_v29 = vpack.c.bf16 %v288_v18, %v287_v17 }
  0x2d   : > { %v209_v24 = vld [vmem:[%s4399_s13 + $0x8] sm:$0xff]  ;;  %v4573_v30 = vpack.c.bf16 %v3230_v22, %v3229_v20  ;;  %v4575_v34 = vpack.c.bf16 %v3232_v28, %v3231_v25  ;;  %v210_v35 = vld [vmem:[%s4399_s13 + $0x18] sm:$0xff]  ;;  %v211_v36 = vld [vmem:[%s4399_s13 + $0x20] sm:$0xff] }
  0x2e   : > { %v240_v31 = vpack.c.bf16 %v209_v24, %v208_v23  ;;  %v3233_v37 = vld [vmem:[%s4399_s13 + $0xf2] sm:$0xff]  ;;  %v3234_v40 = vld [vmem:[%s4399_s13 + $0xfa] sm:$0xff]  ;;  %v3235_v43 = vld [vmem:[%s4399_s13 + $0x10a] sm:$0xff]  ;;  %v4592_v45 = vpack.c.bf16 %v211_v36, %v210_v35 }
  0x2f   : > { %v212_v41 = vld [vmem:[%s4399_s13 + $0x30] sm:$0xff]  ;;  %v213_v42 = vld [vmem:[%s4399_s13 + $0x38] sm:$0xff]  ;;  %v4594_v46 = vpack.c.bf16 %v3234_v40, %v3233_v37  ;;  %v4607_v55 = vld [vmem:[%s5110_s1 + $0x6] sm:$0x3] }
  0x30   : > { %3586 = vmatmul.mubr.msk.bf16.gmra.mrb[8].mxu1 %vm307_vm1, %v4441_v27  ;;  %v3236_v44 = vld [vmem:[%s4399_s13 + $0x112] sm:$0xff]  ;;  %v214_v56 = vld [vmem:[%s4399_s13 + $0x48] sm:$0xff]  ;;  %v216_v59 = vld [vmem:[%s4399_s13 + $0x60] sm:$0xff] }
  0x31   : > { %3722 = vmatmul.mubr.msk.bf16.gmra.mrb[8].mxu0 %vm307_vm1, %v4455_v32  ;;  %3589 = vmatprep.mubr.msk.bf16.mxu1 %vm307_vm1, %v4455_v32  ;;  %v4600_v54 = vpack.c.bf16 %v3236_v44, %v3235_v43  ;;  %v215_v57 = vld [vmem:[%s4399_s13 + $0x50] sm:$0xff]  ;;  %v3237_v21 = vld [vmem:[%s4399_s13 + $0x122] sm:$0xff]  ;;  %v3239_v61 = vld [vmem:[%s4399_s13 + $0x13a] sm:$0xff] }
  0x32   : > { %3725 = vmatprep.mubr.msk.bf16.mxu0 %vm307_vm1, %v4457_v33  ;;  %v3238_v58 = vld [vmem:[%s4399_s13 + $0x12a] sm:$0xff]  ;;  %v3240_v4 = vld [vmem:[%s4399_s13 + $0x142] sm:$0xff]  ;;  %v4625_v5 = vpack.c.bf16 %v215_v57, %v214_v56  ;;  %v218_v9 = vld [vmem:[%s4399_s13 + $0x78] sm:$0xff] }
  0x33   : > { %v217_v60 = vld [vmem:[%s4399_s13 + $0x68] sm:$0xff]  ;;  %v4627_v6 = vpack.c.bf16 %v3238_v58, %v3237_v21  ;;  %v4631_v8 = vpack.c.bf16 %v3240_v4, %v3239_v61  ;;  %v219_v10 = vld [vmem:[%s4399_s13 + $0x80] sm:$0xff]  ;;  %v3241_v11 = vld [vmem:[%s4399_s13 + $0x152] sm:$0xff]  ;;  %v2304_v61 = vsel %vm356_vm0, %v4505_v53, 0 }
  0x34   : > { %v4629_v7 = vpack.c.bf16 %v217_v60, %v216_v59  ;;  %v3242_v17 = vld [vmem:[%s4399_s13 + $0x15a] sm:$0xff]  ;;  %v220_v18 = vld [vmem:[%s4399_s13 + $0x90] sm:$0xff]  ;;  %v4649_v24 = vpack.c.bf16 %v219_v10, %v218_v9  ;;  %v222_v35 = vld [vmem:[%s4399_s13 + $0xa8] sm:$0xff] }
  0x35   : > { %v221_v20 = vld [vmem:[%s4399_s13 + $0x98] sm:$0xff]  ;;  %v3243_v22 = vld [vmem:[%s4399_s13 + $0x16a] sm:$0xff]  ;;  %v4651_v25 = vpack.c.bf16 %v3242_v17, %v3241_v11  ;;  %v3245_v37 = vld [vmem:[%s4399_s13 + $0x182] sm:$0xff] }
  0x36   : > { %v3244_v23 = vld [vmem:[%s4399_s13 + $0x172] sm:$0xff]  ;;  %v4653_v28 = vpack.c.bf16 %v221_v20, %v220_v18  ;;  %v3246_v40 = vld [vmem:[%s4399_s13 + $0x18a] sm:$0xff]  ;;  %v227_v57 = vld [vmem:[%s4399_s13 + $0xe0] sm:$0xff] }
  0x37   : > { %v223_v36 = vld [vmem:[%s4399_s13 + $0xb0] sm:$0xff]  ;;  %v4673_v44 = vpack.c.bf16 %v3246_v40, %v3245_v37  ;;  %v226_v56 = vld [vmem:[%s4399_s13 + $0xd8] sm:$0xff]  ;;  %v230_v9 = vld [vmem:[%s4399_s13 + $0x108] sm:$0xff] }
  0x38   : > { %3590 = vmatmul.mubr.msk.bf16.gmra.mrb[12].mxu1 %vm307_vm1, %v4457_v33  ;;  %v4671_v43 = vpack.c.bf16 %v223_v36, %v222_v35  ;;  %v228_v21 = vld [vmem:[%s4399_s13 + $0xf0] sm:$0xff]  ;;  %v229_v58 = vld [vmem:[%s4399_s13 + $0xf8] sm:$0xff]  ;;  %v4689_v59 = vpack.c.bf16 %v227_v57, %v226_v56  ;;  %v233_v11 = vld [vmem:[%s4399_s13 + $0x128] sm:$0xff] }
  0x39   : > { %3726 = vmatmul.mubr.msk.bf16.gmra.mrb[12].mxu0 %vm307_vm1, %v4471_v38  ;;  %3593 = vmatprep.mubr.msk.bf16.mxu1 %vm307_vm1, %v4471_v38  ;;  %v4691_v60 = vpack.c.bf16 %v229_v58, %v228_v21  ;;  %v3394_v4 = vld [vmem:[%s5110_s1 + $0x10] sm:$0x3]  ;;  %v234_v20 = vld [vmem:[%s4399_s13 + $0x138] sm:$0xff]  ;;  %v238_v40 = vld [vmem:[%s4399_s13 + $0x168] sm:$0xff]  ;;  %v1127_v58 = vsel %vm356_vm0, %v4607_v55, 0 }
  0x3a   : > { %3747 = vmatprep.mubr.msk.bf16.mxu0 %vm307_vm1, %v4473_v39  ;;  %v231_v10 = vld [vmem:[%s4399_s13 + $0x110] sm:$0xff]  ;;  %v237_v35 = vld [vmem:[%s4399_s13 + $0x158] sm:$0xff] }
  0x3b   : > { %v4711_v17 = vpack.c.bf16 %v231_v10, %v230_v9  ;;  %v734_v56 = vld [vmem:[%s4399_s13 + $0xa] sm:$0xff]  ;;  %v3295_v9 = vld [vmem:[%s4399_s13 + $0x1a0] sm:$0xff] }
  0x40   : > { %3594 = vmatmul.mubr.msk.bf16.gmra.mrb[16].mxu1 %vm307_vm1, %v4491_v48 }
  0x41   : > { %3748 = vmatmul.mubr.msk.bf16.vlgmr.msra.gmra.mrb[0].mxu0 %vm307_vm1, %v4493_v49  ;;  %3597 = vmatprep.mubr.msk.bf16.mxu1 %vm307_vm1, %v4495_v50 }
  0x42   : > { %3780 = vmatpush3.bf16.msra.mxu0 %v2010_v52  ;;  %3751 = vmatprep.mubr.msk.bf16.mxu0 %vm307_vm1, %v4497_v51  ;;  %v4598_v52 = vpack.c.bf16 %v213_v42, %v212_v41  ;;  %v224_v41 = vld [vmem:[%s4399_s13 + $0xc0] sm:$0xff]  ;;  %v225_v42 = vld [vmem:[%s4399_s13 + $0xc8] sm:$0xff] }
  0x43   : > { %4147 = vmatprep.subr.msk.bf16.mxu0 %vm356_vm0, %v4505_v53  ;;  %v232_v53 = vld [vmem:[%s4399_s13 + $0x120] sm:$0xff] }
  0x44   : > { %v4713_v18 = vpack.c.bf16 %v233_v11, %v232_v53  ;;  %v2598_v53 = vsel %vm356_vm0, %v3394_v4, 0 }
  0x48   : > { %3598 = vmatmul.mubr.msk.bf16.gmra.mrb[20].mxu1 %vm307_vm1, %v4523_v62 }
  0x49   : > { %3752 = vmatmul.mubr.msk.bf16.gmra.mrb[4].mxu0 %vm307_vm1, %v4525_v63  ;;  %3601 = vmatprep.mubr.msk.bf16.mxu1 %vm307_vm1, %v4527_v0 }
  0x4a   : > { %3755 = vmatprep.mubr.msk.bf16.mxu0 %vm307_vm1, %v4529_v2 }
  0x50   : > { %3602 = vmatmul.mubr.msk.bf16.gmra.mrb[24].mxu1 %vm307_vm1, %v4547_v12 }
  0x51   : > { %3756 = vmatmul.mubr.msk.bf16.gmra.mrb[8].mxu0 %vm307_vm1, %v4549_v13  ;;  %3605 = vmatprep.mubr.msk.bf16.mxu1 %vm307_vm1, %v4551_v14 }
  0x52   : > { %3759 = vmatprep.mubr.msk.bf16.mxu0 %vm307_vm1, %v4553_v16 }
  0x58   : > { %3606 = vmatmul.mubr.msk.bf16.gmra.mrb[28].mxu1 %vm307_vm1, %v4571_v29 }
  0x59   : > { %3760 = vmatmul.mubr.msk.bf16.gmra.mrb[12].mxu0 %vm307_vm1, %v4573_v30  ;;  %3611 = vmatprep.mubr.msk.bf16.mxu1 %vm307_vm1, %v240_v31  ;;  %v4655_v31 = vpack.c.bf16 %v3244_v23, %v3243_v22  ;;  %v235_v22 = vld [vmem:[%s4399_s13 + $0x140] sm:$0xff]  ;;  %v236_v23 = vld [vmem:[%s4399_s13 + $0x150] sm:$0xff] }
  0x5a   : > { %3763 = vmatprep.mubr.msk.bf16.mxu0 %vm307_vm1, %v4575_v34  ;;  %v4727_v36 = vpack.c.bf16 %v235_v22, %v234_v20  ;;  %v4729_v37 = vpack.c.bf16 %v237_v35, %v236_v23 }
  0x60   : > { %3612 = vmatmul.mubr.msk.bf16.vlgmr.msra.gmra.mrb[0].mxu1 %vm307_vm1, %v4592_v45 }
  0x61   : > { %3644 = vmatpush3.bf16.msra.mxu1 %v832_v47  ;;  %3764 = vmatmul.mubr.msk.bf16.gmra.mrb[16].mxu0 %vm307_vm1, %v4594_v46  ;;  %v4675_v47 = vpack.c.bf16 %v225_v42, %v224_v41  ;;  %v239_v41 = vld [vmem:[%s4399_s13 + $0x170] sm:$0xff]  ;;  %v733_v42 = vld [vmem:[%s4399_s13 + $0x2] sm:$0xff] }
  0x62   : > { %3615 = vmatprep.mubr.msk.bf16.mxu1 %vm307_vm1, %v4598_v52  ;;  %3767 = vmatprep.mubr.msk.bf16.mxu0 %vm307_vm1, %v4600_v54  ;;  %v4743_v57 = vpack.c.bf16 %v239_v41, %v238_v40  ;;  %v765_v21 = vpack.c.bf16 %v734_v56, %v733_v42 }
  0x63   : > { %4142 = vmatprep.subr.msk.bf16.mxu1 %vm356_vm0, %v4607_v55  ;;  %v3293_v55 = vld [vmem:[%s4399_s13 + $0x188] sm:$0xff] }
  0x68   : > { %3616 = vmatmul.mubr.msk.bf16.gmra.mrb[4].mxu1 %vm307_vm1, %v4625_v5 }
  0x69   : > { %3768 = vmatmul.mubr.msk.bf16.gmra.mrb[20].mxu0 %vm307_vm1, %v4627_v6  ;;  %3619 = vmatprep.mubr.msk.bf16.mxu1 %vm307_vm1, %v4629_v7 }
  0x6a   : > { %3771 = vmatprep.mubr.msk.bf16.mxu0 %vm307_vm1, %v4631_v8 }
  0x70   : > { %3620 = vmatmul.mubr.msk.bf16.gmra.mrb[8].mxu1 %vm307_vm1, %v4649_v24 }
  0x71   : > { %3772 = vmatmul.mubr.msk.bf16.gmra.mrb[24].mxu0 %vm307_vm1, %v4651_v25  ;;  %3623 = vmatprep.mubr.msk.bf16.mxu1 %vm307_vm1, %v4653_v28 }
  0x72   : > { %3775 = vmatprep.mubr.msk.bf16.mxu0 %vm307_vm1, %v4655_v31 }
  0x78   : > { %3624 = vmatmul.mubr.msk.bf16.gmra.mrb[12].mxu1 %vm307_vm1, %v4671_v43 }
  0x79   : > { %3776 = vmatmul.mubr.msk.bf16.gmra.mrb[28].mxu0 %vm307_vm1, %v4673_v44  ;;  %3627 = vmatprep.mubr.msk.bf16.mxu1 %vm307_vm1, %v4675_v47 }
  0x7a   : > { %3781 = vmatprep.mubr.msk.bf16.mxu0 %vm307_vm1, %v4598_v52 }
  0x80   : > { %3628 = vmatmul.mubr.msk.bf16.gmra.mrb[16].mxu1 %vm307_vm1, %v4689_v59 }
  0x81   : > { %3782 = vmatmul.mubr.msk.bf16.vlgmr.msra.gmra.mrb[0].mxu0 %vm307_vm1, %v4625_v5  ;;  %3631 = vmatprep.mubr.msk.bf16.mxu1 %vm307_vm1, %v4691_v60 }
  0x82   : > { %3814 = vmatpush3.bf16.msra.mxu0 %v2304_v61  ;;  %3785 = vmatprep.mubr.msk.bf16.mxu0 %vm307_vm1, %v4629_v7 }
  0x83   : > { %4148 = vmatprep.subr.msk.bf16.mxu0 %vm356_vm0, %v3394_v4 }
  0x88   : > { %3632 = vmatmul.mubr.msk.bf16.gmra.mrb[20].mxu1 %vm307_vm1, %v4711_v17 }
  0x89   : > { %3786 = vmatmul.mubr.msk.bf16.gmra.mrb[4].mxu0 %vm307_vm1, %v4649_v24  ;;  %3635 = vmatprep.mubr.msk.bf16.mxu1 %vm307_vm1, %v4713_v18 }
  0x8a   : > { %3789 = vmatprep.mubr.msk.bf16.mxu0 %vm307_vm1, %v4653_v28 }
  0x90   : > { %3636 = vmatmul.mubr.msk.bf16.gmra.mrb[24].mxu1 %vm307_vm1, %v4727_v36 }
  0x91   : > { %3790 = vmatmul.mubr.msk.bf16.gmra.mrb[8].mxu0 %vm307_vm1, %v4671_v43  ;;  %3639 = vmatprep.mubr.msk.bf16.mxu1 %vm307_vm1, %v4729_v37 }
  0x92   : > { %3793 = vmatprep.mubr.msk.bf16.mxu0 %vm307_vm1, %v4675_v47 }
  0x98   : > { %3640 = vmatmul.mubr.msk.bf16.gmra.mrb[28].mxu1 %vm307_vm1, %v4743_v57 }
  0x99   : > { %3794 = vmatmul.mubr.msk.bf16.gmra.mrb[12].mxu0 %vm307_vm1, %v4689_v59  ;;  %3645 = vmatprep.mubr.msk.bf16.mxu1 %vm307_vm1, %v765_v21 }
  0x9a   : > { %3797 = vmatprep.mubr.msk.bf16.mxu0 %vm307_vm1, %v4691_v60 }
  0xa0   : > { %3646 = vmatmul.mubr.msk.bf16.vlgmr.msra.gmra.mrb[0].mxu1 %vm307_vm1, %v4473_v39  ;;  %v3292_v39 = vld [vmem:[%s4399_s13 + $0x180] sm:$0xff] }
  0xa1   : > { %3678 = vmatpush3.bf16.msra.mxu1 %v1127_v58  ;;  %3798 = vmatmul.mubr.msk.bf16.gmra.mrb[16].mxu0 %vm307_vm1, %v4711_v17  ;;  %v4774_v61 = vpack.c.bf16 %v3293_v55, %v3292_v39 }
  0xa2   : > { %3649 = vmatprep.mubr.msk.bf16.mxu1 %vm307_vm1, %v4493_v49  ;;  %3801 = vmatprep.mubr.msk.bf16.mxu0 %vm307_vm1, %v4713_v18 }
  0xa3   : > { %4144 = vmatprep.subr.msk.bf16.mxu1 %vm356_vm0, %v4375_v1  ;;  %v3294_v1 = vld [vmem:[%s4399_s13 + $0x198] sm:$0xff] }
  0xa4   : > { %v1958_v10 = vpack.c.bf16 %v3295_v9, %v3294_v1 }
  0xa8   : > { %3650 = vmatmul.mubr.msk.bf16.gmra.mrb[4].mxu1 %vm307_vm1, %v4497_v51 }
  0xa9   : > { %3802 = vmatmul.mubr.msk.bf16.gmra.mrb[20].mxu0 %vm307_vm1, %v4727_v36  ;;  %3653 = vmatprep.mubr.msk.bf16.mxu1 %vm307_vm1, %v4525_v63 }
  0xaa   : > { %3805 = vmatprep.mubr.msk.bf16.mxu0 %vm307_vm1, %v4729_v37 }
  0xb0   : > { %3654 = vmatmul.mubr.msk.bf16.gmra.mrb[8].mxu1 %vm307_vm1, %v4529_v2 }
  0xb1   : > { %3806 = vmatmul.mubr.msk.bf16.gmra.mrb[24].mxu0 %vm307_vm1, %v4743_v57  ;;  %3657 = vmatprep.mubr.msk.bf16.mxu1 %vm307_vm1, %v4549_v13 }
  0xb2   : > { %3809 = vmatprep.mubr.msk.bf16.mxu0 %vm307_vm1, %v4774_v61 }
  0xb8   : > { %3658 = vmatmul.mubr.msk.bf16.gmra.mrb[12].mxu1 %vm307_vm1, %v4553_v16 }
  0xb9   : > { %3810 = vmatmul.mubr.msk.bf16.gmra.mrb[28].mxu0 %vm307_vm1, %v1958_v10  ;;  %3661 = vmatprep.mubr.msk.bf16.mxu1 %vm307_vm1, %v4573_v30 }
  0xba   : > { %3815 = vmatprep.mubr.msk.bf16.mxu0 %vm307_vm1, %v4408_v15  ;;  %v3342_v15 = vld [vmem:[%s4399_s13 + $0x189] sm:$0xff] }
  0xc0   : > { %3662 = vmatmul.mubr.msk.bf16.gmra.mrb[16].mxu1 %vm307_vm1, %v4575_v34 }
  0xc1   : > { %3816 = vmatmul.mubr.msk.bf16.vlgmr.msra.gmra.mrb[0].mxu0 %vm307_vm1, %v4414_v19  ;;  %3665 = vmatprep.mubr.msk.bf16.mxu1 %vm307_vm1, %v4594_v46 }
  0xc2   : > { %3848 = vmatpush3.bf16.msra.mxu0 %v2598_v53  ;;  %3819 = vmatprep.mubr.msk.bf16.mxu0 %vm307_vm1, %v4439_v26  ;;  %v3343_v26 = vld [vmem:[%s4399_s13 + $0x199] sm:$0xff] }
  0xc8   : > { %3666 = vmatmul.mubr.msk.bf16.gmra.mrb[20].mxu1 %vm307_vm1, %v4600_v54 }
  0xc9   : > { %3820 = vmatmul.mubr.msk.bf16.gmra.mrb[4].mxu0 %vm307_vm1, %v4441_v27  ;;  %3669 = vmatprep.mubr.msk.bf16.mxu1 %vm307_vm1, %v4627_v6  ;;  %v3344_v27 = vld [vmem:[%s4399_s13 + $0x1a1] sm:$0xff] }
  0xca   : > { %3823 = vmatprep.mubr.msk.bf16.mxu0 %vm307_vm1, %v4455_v32  ;;  %v2252_v32 = vpack.c.bf16 %v3344_v27, %v3343_v26 }
  0xd0   : > { %3670 = vmatmul.mubr.msk.bf16.gmra.mrb[24].mxu1 %vm307_vm1, %v4631_v8 }
  0xd1   : > { %3824 = vmatmul.mubr.msk.bf16.gmra.mrb[8].mxu0 %vm307_vm1, %v4457_v33  ;;  %3673 = vmatprep.mubr.msk.bf16.mxu1 %vm307_vm1, %v4651_v25  ;;  %v3392_v33 = vld [vmem:[%s4399_s13 + $0x19a] sm:$0xff] }
  0xd2   : > { %3827 = vmatprep.mubr.msk.bf16.mxu0 %vm307_vm1, %v4471_v38  ;;  %v3393_v38 = vld [vmem:[%s4399_s13 + $0x1a2] sm:$0xff] }
  0xd8   : > { %3674 = vmatmul.mubr.msk.bf16.gmra.mrb[28].mxu1 %vm307_vm1, %v4655_v31 }
  0xd9   : > { %3828 = vmatmul.mubr.msk.bf16.gmra.mrb[12].mxu0 %vm307_vm1, %v4491_v48  ;;  %3679 = vmatprep.mubr.msk.bf16.mxu1 %vm307_vm1, %v4592_v45 }
  0xda   : > { %3831 = vmatprep.mubr.msk.bf16.mxu0 %vm307_vm1, %v4495_v50 }
  0xe0   : > { %3680 = vmatmul.mubr.msk.bf16.vlgmr.msra.gmra.mrb[0].mxu1 %vm307_vm1, %v4598_v52 }
  0xe1   : > { %3882 = vmatpush3.bf16.msra.mxu1 %v4384_v3  ;;  %3832 = vmatmul.mubr.msk.bf16.gmra.mrb[16].mxu0 %vm307_vm1, %v4523_v62  ;;  %v3341_v3 = vld [vmem:[%s4399_s13 + $0x181] sm:$0xff]  ;;  %s3420_s13 = sshll.u32 %s4342_s19, 12 }
  0xe2   : > { %3683 = vmatprep.mubr.msk.bf16.mxu1 %vm307_vm1, %v4625_v5  ;;  %3835 = vmatprep.mubr.msk.bf16.mxu0 %vm307_vm1, %v4527_v0  ;;  %v2251_v19 = vpack.c.bf16 %v3342_v15, %v3341_v3  ;;  %s5014_s23 = scalar_lea.hbm %s5112_s3, %s3420_s13 }
  0xe8   : > { %3684 = vmatmul.mubr.msk.bf16.gmra.mrb[4].mxu1 %vm307_vm1, %v4629_v7 }
  0xe9   : > { %3836 = vmatmul.mubr.msk.bf16.gmra.mrb[20].mxu0 %vm307_vm1, %v4547_v12  ;;  %3687 = vmatprep.mubr.msk.bf16.mxu1 %vm307_vm1, %v4649_v24 }
  0xea   : > { %3839 = vmatprep.mubr.msk.bf16.mxu0 %vm307_vm1, %v4551_v14 }
  0xf0   : > { %3688 = vmatmul.mubr.msk.bf16.gmra.mrb[8].mxu1 %vm307_vm1, %v4653_v28 }
  0xf1   : > { %3840 = vmatmul.mubr.msk.bf16.gmra.mrb[24].mxu0 %vm307_vm1, %v4571_v29  ;;  %3691 = vmatprep.mubr.msk.bf16.mxu1 %vm307_vm1, %v4671_v43 }
  0xf2   : > { %3843 = vmatprep.mubr.msk.bf16.mxu0 %vm307_vm1, %v2251_v19 }
  0xf8   : > { %3692 = vmatmul.mubr.msk.bf16.gmra.mrb[12].mxu1 %vm307_vm1, %v4675_v47 }
  0xf9   : > { %3844 = vmatmul.mubr.msk.bf16.gmra.mrb[28].mxu0 %vm307_vm1, %v2252_v32  ;;  %3695 = vmatprep.mubr.msk.bf16.mxu1 %vm307_vm1, %v4689_v59 }
  0xfa   : > { %3849 = vmatprep.mubr.msk.bf16.mxu0 %vm307_vm1, %v4493_v49 }
 0x100   : > { %3696 = vmatmul.mubr.msk.bf16.gmra.mrb[16].mxu1 %vm307_vm1, %v4691_v60 }
 0x101   : > { %3850 = vmatmul.mubr.msk.bf16.vlgmr.msra.gmra.mrb[0].mxu0 %vm307_vm1, %v4497_v51  ;;  %3699 = vmatprep.mubr.msk.bf16.mxu1 %vm307_vm1, %v4711_v17 }
 0x102   : > { %3853 = vmatprep.mubr.msk.bf16.mxu0 %vm307_vm1, %v4525_v63 }
 0x108   : > { %3700 = vmatmul.mubr.msk.bf16.gmra.mrb[20].mxu1 %vm307_vm1, %v4713_v18 }
 0x109   : > { %3854 = vmatmul.mubr.msk.bf16.gmra.mrb[4].mxu0 %vm307_vm1, %v4529_v2  ;;  %3703 = vmatprep.mubr.msk.bf16.mxu1 %vm307_vm1, %v4727_v36 }
 0x10a   : > { %3857 = vmatprep.mubr.msk.bf16.mxu0 %vm307_vm1, %v4549_v13 }
 0x110   : > { %3704 = vmatmul.mubr.msk.bf16.gmra.mrb[24].mxu1 %vm307_vm1, %v4729_v37 }
 0x111   : > { %3858 = vmatmul.mubr.msk.bf16.gmra.mrb[8].mxu0 %vm307_vm1, %v4553_v16  ;;  %3707 = vmatprep.mubr.msk.bf16.mxu1 %vm307_vm1, %v4743_v57 }
 0x112   : > { %3861 = vmatprep.mubr.msk.bf16.mxu0 %vm307_vm1, %v4573_v30 }
 0x118   : > { %3708 = vmatmul.mubr.msk.bf16.gmra.mrb[28].mxu1 %vm307_vm1, %v4774_v61 }
 0x119   : > { %3862 = vmatmul.mubr.msk.bf16.gmra.mrb[12].mxu0 %vm307_vm1, %v4575_v34  ;;  %3729 = vmatprep.mubr.msk.bf16.mxu1 %vm307_vm1, %v4491_v48  ;;  %v2546_v48 = vpack.c.bf16 %v3393_v38, %v3392_v33 }
 0x11a   : > { %3865 = vmatprep.mubr.msk.bf16.mxu0 %vm307_vm1, %v4594_v46 }
 0x120   : > { %3730 = vmatmul.mubr.msk.bf16.vlgmr.msra.gmra.mrb[16].mxu1 %vm307_vm1, %v4495_v50 }
 0x121   : > { %3866 = vmatmul.mubr.msk.bf16.gmra.mrb[16].mxu0 %vm307_vm1, %v4600_v54  ;;  %3733 = vmatprep.mubr.msk.bf16.mxu1 %vm307_vm1, %v4523_v62  ;;  %v4937_v54 = vld [vmem:[%s5111_s2] ss:$0 sm:$0xff] }
 0x122   : > { %3869 = vmatprep.mubr.msk.bf16.mxu0 %vm307_vm1, %v4627_v6 }
 0x128   : > { %3734 = vmatmul.mubr.msk.bf16.gmra.mrb[20].mxu1 %vm307_vm1, %v4527_v0 }
 0x129   : > { %3870 = vmatmul.mubr.msk.bf16.gmra.mrb[20].mxu0 %vm307_vm1, %v4631_v8  ;;  %3737 = vmatprep.mubr.msk.bf16.mxu1 %vm307_vm1, %v4547_v12 }
 0x12a   : > { %3873 = vmatprep.mubr.msk.bf16.mxu0 %vm307_vm1, %v4651_v25 }
 0x130   : > { %3738 = vmatmul.mubr.msk.bf16.gmra.mrb[24].mxu1 %vm307_vm1, %v4551_v14 }
 0x131   : > { %3874 = vmatmul.mubr.msk.bf16.gmra.mrb[24].mxu0 %vm307_vm1, %v4655_v31  ;;  %3741 = vmatprep.mubr.msk.bf16.mxu1 %vm307_vm1, %v4571_v29 }
 0x132   : > { %3877 = vmatprep.mubr.msk.bf16.mxu0 %vm307_vm1, %v4673_v44 }
 0x138   : > { %3742 = vmatmul.mubr.msk.bf16.gmra.mrb[28].mxu1 %vm307_vm1, %v2251_v19 }
 0x139   : > { %3878 = vmatmul.mubr.msk.bf16.gmra.mrb[28].mxu0 %vm307_vm1, %v2546_v48 }
 0x1b3   : > { %v3681_v49 = vpop.f32.mrb[0].mxu1 }
 0x1b4   : > { %v1163_v50 = vpop.f32.mrb[1].mxu1 }
 0x1b5   : > { %v3682_v51 = vpop.f32.mrb[2].mxu1 }
 0x1b6   : > { %v1166_v62 = vpop.f32.mrb[3].mxu1 }
 0x1bb   : > { %v3685_v63 = vpop.f32.mrb[4].mxu1 }
 0x1bc   : > { %v1179_v0 = vpop.f32.mrb[5].mxu1 }
 0x1bd   : > { %v3686_v2 = vpop.f32.mrb[6].mxu1 }
 0x1be   : > { %v1182_v12 = vpop.f32.mrb[7].mxu1 }
 0x1c3   : > { %v3689_v13 = vpop.f32.mrb[8].mxu1 }
 0x1c4   : > { %v1195_v14 = vpop.f32.mrb[9].mxu1 }
 0x1c5   : > { %v3690_v16 = vpop.f32.mrb[10].mxu1 }
 0x1c6   : > { %v4921_v29 = vpop.f32.mrb[11].mxu1 }
 0x1cb   : > { %v4923_v30 = vpop.f32.mrb[12].mxu1 }
 0x1cc   : > { %v4925_v34 = vpop.f32.mrb[13].mxu1 }
 0x1cd   : > { %v4927_v45 = vpop.f32.mrb[14].mxu1 }
 0x1ce   : > { %v4929_v46 = vpop.f32.mrb[15].mxu1 }
 0x1d4   : > { %v3851_v52 = vpop.f32.mrb[0].mxu0 }
 0x1d5   : > { %v3883_v5 = vadd.f32 %v3851_v52, %v3681_v49  ;;  %v2634_v6 = vpop.f32.mrb[1].mxu0 }
 0x1d6   : > { %v3884_v7 = vadd.f32 %v2634_v6, %v1163_v50  ;;  %v3852_v8 = vpop.f32.mrb[2].mxu0 }
 0x1d7   : > { %v2802_v24 = vadd.f32 %v3883_v5, %v4937_v54  ;;  %v3885_v25 = vadd.f32 %v3852_v8, %v3682_v51  ;;  %v2637_v28 = vpop.f32.mrb[3].mxu0 }
 0x1d8   : > { %v2800_v31 = vadd.f32 %v3884_v7, %v4937_v54  ;;  %v3886_v43 = vadd.f32 %v2637_v28, %v1166_v62 }
 0x1d9   : > { %v2834_v44 = vmax.f32 %v2802_v24, 0.0  ;;  %v2803_v47 = vadd.f32 %v3885_v25, %v4937_v54 }
 0x1da   : > { %v2832_v59 = vmax.f32 %v2800_v31, 0.0  ;;  %v2801_v60 = vadd.f32 %v3886_v43, %v4937_v54 }
 0x1db   : > { %2901 = vst [vmem:[%s4944_s11 + $0x10] sm:$0xff] %v2834_v44  ;;  %v2835_v4 = vmax.f32 %v2803_v47, 0.0 }
 0x1dc   : > { %v2864_v11 = vadd.f32 %v2834_v44, %v2832_v59  ;;  %2899 = vst [vmem:[%s4944_s11] sm:$0xff] %v2832_v59  ;;  %v2833_v17 = vmax.f32 %v2801_v60, 0.0  ;;  %v3855_v18 = vpop.f32.mrb[4].mxu0 }
 0x1dd   : > { %2902 = vst [vmem:[%s4944_s11 + $0x18] sm:$0xff] %v2835_v4  ;;  %v3887_v20 = vadd.f32 %v3855_v18, %v3685_v63  ;;  %v2650_v22 = vpop.f32.mrb[5].mxu0 }
 0x1de   : > { %v2879_v23 = vadd.f32 %v2835_v4, %v2833_v17  ;;  %2900 = vst [vmem:[%s4944_s11 + $0x8] sm:$0xff] %v2833_v17  ;;  %v3888_v35 = vadd.f32 %v2650_v22, %v1179_v0  ;;  %v3856_v36 = vpop.f32.mrb[6].mxu0 }
 0x1df   : > { %v2806_v37 = vadd.f32 %v3887_v20, %v4937_v54  ;;  %v3889_v40 = vadd.f32 %v3856_v36, %v3686_v2  ;;  %v2653_v41 = vpop.f32.mrb[7].mxu0 }
 0x1e0   : > { %v2804_v42 = vadd.f32 %v3888_v35, %v4937_v54  ;;  %v3890_v56 = vadd.f32 %v2653_v41, %v1182_v12 }
 0x1e1   : > { %v2838_v57 = vmax.f32 %v2806_v37, 0.0  ;;  %v2807_v21 = vadd.f32 %v3889_v40, %v4937_v54 }
 0x1e2   : > { %v2836_v58 = vmax.f32 %v2804_v42, 0.0  ;;  %v2805_v39 = vadd.f32 %v3890_v56, %v4937_v54 }
 0x1e3   : > { %2905 = vst [vmem:[%s4944_s11 + $0x30] sm:$0xff] %v2838_v57  ;;  %v2839_v55 = vmax.f32 %v2807_v21, 0.0 }
 0x1e4   : > { %v2865_v61 = vadd.f32 %v2864_v11, %v2836_v58  ;;  %2903 = vst [vmem:[%s4944_s11 + $0x20] sm:$0xff] %v2836_v58  ;;  %v2837_v1 = vmax.f32 %v2805_v39, 0.0  ;;  %v3859_v9 = vpop.f32.mrb[8].mxu0 }
 0x1e5   : > { %2906 = vst [vmem:[%s4944_s11 + $0x38] sm:$0xff] %v2839_v55  ;;  %v3891_v10 = vadd.f32 %v3859_v9, %v3689_v13  ;;  %v2666_v53 = vpop.f32.mrb[9].mxu0 }
 0x1e6   : > { %v2880_v3 = vadd.f32 %v2879_v23, %v2837_v1  ;;  %2904 = vst [vmem:[%s4944_s11 + $0x28] sm:$0xff] %v2837_v1  ;;  %v3892_v15 = vadd.f32 %v2666_v53, %v1195_v14  ;;  %v2866_v19 = vadd.f32 %v2865_v61, %v2838_v57  ;;  %v3860_v26 = vpop.f32.mrb[10].mxu0 }
 0x1e7   : > { %v2810_v27 = vadd.f32 %v3891_v10, %v4937_v54  ;;  %v3893_v32 = vadd.f32 %v3860_v26, %v3690_v16  ;;  %v2669_v33 = vpop.f32.mrb[11].mxu0 }
 0x1e8   : > { %v2808_v38 = vadd.f32 %v3892_v15, %v4937_v54  ;;  %v3894_v48 = vadd.f32 %v2669_v33, %v4921_v29  ;;  %v2881_v49 = vadd.f32 %v2880_v3, %v2839_v55 }
 0x1e9   : > { %v2842_v50 = vmax.f32 %v2810_v27, 0.0  ;;  %v2811_v51 = vadd.f32 %v3893_v32, %v4937_v54 }
 0x1ea   : > { %v2840_v62 = vmax.f32 %v2808_v38, 0.0  ;;  %v2809_v63 = vadd.f32 %v3894_v48, %v4937_v54 }
 0x1eb   : > { %2909 = vst [vmem:[%s4944_s11 + $0x50] sm:$0xff] %v2842_v50  ;;  %v2843_v0 = vmax.f32 %v2811_v51, 0.0 }
 0x1ec   : > { %v2867_v2 = vadd.f32 %v2866_v19, %v2840_v62  ;;  %2907 = vst [vmem:[%s4944_s11 + $0x40] sm:$0xff] %v2840_v62  ;;  %v2841_v12 = vmax.f32 %v2809_v63, 0.0  ;;  %v3863_v13 = vpop.f32.mrb[12].mxu0 }
 0x1ed   : > { %2910 = vst [vmem:[%s4944_s11 + $0x58] sm:$0xff] %v2843_v0  ;;  %v3895_v14 = vadd.f32 %v3863_v13, %v4923_v30  ;;  %v2682_v16 = vpop.f32.mrb[13].mxu0 }
 0x1ee   : > { %v2882_v29 = vadd.f32 %v2881_v49, %v2841_v12  ;;  %2908 = vst [vmem:[%s4944_s11 + $0x48] sm:$0xff] %v2841_v12  ;;  %v3896_v52 = vadd.f32 %v2682_v16, %v4925_v34  ;;  %v2868_v5 = vadd.f32 %v2867_v2, %v2842_v50  ;;  %v3864_v6 = vpop.f32.mrb[14].mxu0 }
 0x1ef   : > { %v2814_v7 = vadd.f32 %v3895_v14, %v4937_v54  ;;  %v3897_v8 = vadd.f32 %v3864_v6, %v4927_v45  ;;  %v2685_v24 = vpop.f32.mrb[15].mxu0 }
 0x1f0   : > { %v2812_v25 = vadd.f32 %v3896_v52, %v4937_v54  ;;  %v3898_v28 = vadd.f32 %v2685_v24, %v4929_v46  ;;  %v2883_v30 = vadd.f32 %v2882_v29, %v2843_v0 }
 0x1f1   : > { %v2846_v31 = vmax.f32 %v2814_v7, 0.0  ;;  %v2815_v43 = vadd.f32 %v3897_v8, %v4937_v54 }
 0x1f2   : > { %v2844_v44 = vmax.f32 %v2812_v25, 0.0  ;;  %v2813_v34 = vadd.f32 %v3898_v28, %v4937_v54 }
 0x1f3   : > { %2913 = vst [vmem:[%s4944_s11 + $0x70] sm:$0xff] %v2846_v31  ;;  %v2847_v47 = vmax.f32 %v2815_v43, 0.0  ;;  %v3731_v59 = vpop.f32.mrb[16].mxu1 }
 0x1f4   : > { %v2869_v60 = vadd.f32 %v2868_v5, %v2844_v44  ;;  %2911 = vst [vmem:[%s4944_s11 + $0x60] sm:$0xff] %v2844_v44  ;;  %v2845_v45 = vmax.f32 %v2813_v34, 0.0  ;;  %v3867_v4 = vpop.f32.mrb[16].mxu0  ;;  %v1521_v11 = vpop.f32.mrb[17].mxu1 }
 0x1f5   : > { %2914 = vst [vmem:[%s4944_s11 + $0x78] sm:$0xff] %v2847_v47  ;;  %v3899_v17 = vadd.f32 %v3867_v4, %v3731_v59  ;;  %v2698_v18 = vpop.f32.mrb[17].mxu0  ;;  %v3732_v46 = vpop.f32.mrb[18].mxu1 }
 0x1f6   : > { %v2884_v20 = vadd.f32 %v2883_v30, %v2845_v45  ;;  %2912 = vst [vmem:[%s4944_s11 + $0x68] sm:$0xff] %v2845_v45  ;;  %v3900_v22 = vadd.f32 %v2698_v18, %v1521_v11  ;;  %v2870_v23 = vadd.f32 %v2869_v60, %v2846_v31  ;;  %v3868_v35 = vpop.f32.mrb[18].mxu0  ;;  %v1524_v36 = vpop.f32.mrb[19].mxu1 }
 0x1f7   : > { %v2818_v37 = vadd.f32 %v3899_v17, %v4937_v54  ;;  %v3901_v40 = vadd.f32 %v3868_v35, %v3732_v46  ;;  %v2701_v41 = vpop.f32.mrb[19].mxu0 }
 0x1f8   : > { %v2816_v42 = vadd.f32 %v3900_v22, %v4937_v54  ;;  %v3902_v56 = vadd.f32 %v2701_v41, %v1524_v36  ;;  %v2885_v57 = vadd.f32 %v2884_v20, %v2847_v47 }
 0x1f9   : > { %v2850_v21 = vmax.f32 %v2818_v37, 0.0  ;;  %v2819_v58 = vadd.f32 %v3901_v40, %v4937_v54 }
 0x1fa   : > { %v2848_v39 = vmax.f32 %v2816_v42, 0.0  ;;  %v2817_v55 = vadd.f32 %v3902_v56, %v4937_v54 }
 0x1fb   : > { %2917 = vst [vmem:[%s4944_s11 + $0x90] sm:$0xff] %v2850_v21  ;;  %v2851_v61 = vmax.f32 %v2819_v58, 0.0  ;;  %v3735_v1 = vpop.f32.mrb[20].mxu1 }
 0x1fc   : > { %v2871_v9 = vadd.f32 %v2870_v23, %v2848_v39  ;;  %2915 = vst [vmem:[%s4944_s11 + $0x80] sm:$0xff] %v2848_v39  ;;  %v2849_v10 = vmax.f32 %v2817_v55, 0.0  ;;  %v3871_v53 = vpop.f32.mrb[20].mxu0  ;;  %v1537_v3 = vpop.f32.mrb[21].mxu1 }
 0x1fd   : > { %2918 = vst [vmem:[%s4944_s11 + $0x98] sm:$0xff] %v2851_v61  ;;  %v3903_v15 = vadd.f32 %v3871_v53, %v3735_v1  ;;  %v2714_v19 = vpop.f32.mrb[21].mxu0  ;;  %v3736_v26 = vpop.f32.mrb[22].mxu1 }
 0x1fe   : > { %v2886_v27 = vadd.f32 %v2885_v57, %v2849_v10  ;;  %2916 = vst [vmem:[%s4944_s11 + $0x88] sm:$0xff] %v2849_v10  ;;  %v3904_v32 = vadd.f32 %v2714_v19, %v1537_v3  ;;  %v2872_v33 = vadd.f32 %v2871_v9, %v2850_v21  ;;  %v3872_v38 = vpop.f32.mrb[22].mxu0  ;;  %v1540_v48 = vpop.f32.mrb[23].mxu1 }
 0x1ff   : > { %v2822_v49 = vadd.f32 %v3903_v15, %v4937_v54  ;;  %v3905_v50 = vadd.f32 %v3872_v38, %v3736_v26  ;;  %v2717_v51 = vpop.f32.mrb[23].mxu0 }
 0x200   : > { %v2820_v62 = vadd.f32 %v3904_v32, %v4937_v54  ;;  %v3906_v63 = vadd.f32 %v2717_v51, %v1540_v48  ;;  %v2887_v0 = vadd.f32 %v2886_v27, %v2851_v61 }
 0x201   : > { %v2854_v2 = vmax.f32 %v2822_v49, 0.0  ;;  %v2823_v12 = vadd.f32 %v3905_v50, %v4937_v54 }
 0x202   : > { %v2852_v13 = vmax.f32 %v2820_v62, 0.0  ;;  %v2821_v14 = vadd.f32 %v3906_v63, %v4937_v54 }
 0x203   : > { %2921 = vst [vmem:[%s4944_s11 + $0xb0] sm:$0xff] %v2854_v2  ;;  %v2855_v16 = vmax.f32 %v2823_v12, 0.0  ;;  %v3739_v29 = vpop.f32.mrb[24].mxu1 }
 0x204   : > { %v2873_v52 = vadd.f32 %v2872_v33, %v2852_v13  ;;  %2919 = vst [vmem:[%s4944_s11 + $0xa0] sm:$0xff] %v2852_v13  ;;  %v2853_v5 = vmax.f32 %v2821_v14, 0.0  ;;  %v3875_v6 = vpop.f32.mrb[24].mxu0  ;;  %v1553_v7 = vpop.f32.mrb[25].mxu1 }
 0x205   : > { %2922 = vst [vmem:[%s4944_s11 + $0xb8] sm:$0xff] %v2855_v16  ;;  %v3907_v8 = vadd.f32 %v3875_v6, %v3739_v29  ;;  %v2730_v24 = vpop.f32.mrb[25].mxu0  ;;  %v3740_v25 = vpop.f32.mrb[26].mxu1 }
 0x206   : > { %v2888_v28 = vadd.f32 %v2887_v0, %v2853_v5  ;;  %2920 = vst [vmem:[%s4944_s11 + $0xa8] sm:$0xff] %v2853_v5  ;;  %v3908_v30 = vadd.f32 %v2730_v24, %v1553_v7  ;;  %v2874_v31 = vadd.f32 %v2873_v52, %v2854_v2  ;;  %v3876_v43 = vpop.f32.mrb[26].mxu0  ;;  %v1556_v44 = vpop.f32.mrb[27].mxu1 }
 0x207   : > { %v2826_v34 = vadd.f32 %v3907_v8, %v4937_v54  ;;  %v3909_v47 = vadd.f32 %v3876_v43, %v3740_v25  ;;  %v2733_v59 = vpop.f32.mrb[27].mxu0 }
 0x208   : > { %v2824_v60 = vadd.f32 %v3908_v30, %v4937_v54  ;;  %v3910_v45 = vadd.f32 %v2733_v59, %v1556_v44  ;;  %v2889_v4 = vadd.f32 %v2888_v28, %v2855_v16 }
 0x209   : > { %v2858_v11 = vmax.f32 %v2826_v34, 0.0  ;;  %v2827_v17 = vadd.f32 %v3909_v47, %v4937_v54 }
 0x20a   : > { %v2856_v18 = vmax.f32 %v2824_v60, 0.0  ;;  %v2825_v46 = vadd.f32 %v3910_v45, %v4937_v54 }
 0x20b   : > { %2925 = vst [vmem:[%s4944_s11 + $0xd0] sm:$0xff] %v2858_v11  ;;  %v2859_v20 = vmax.f32 %v2827_v17, 0.0  ;;  %v3743_v22 = vpop.f32.mrb[28].mxu1 }
 0x20c   : > { %v2875_v23 = vadd.f32 %v2874_v31, %v2856_v18  ;;  %2923 = vst [vmem:[%s4944_s11 + $0xc0] sm:$0xff] %v2856_v18  ;;  %v2857_v35 = vmax.f32 %v2825_v46, 0.0  ;;  %v3879_v36 = vpop.f32.mrb[28].mxu0  ;;  %v1569_v37 = vpop.f32.mrb[29].mxu1 }
 0x20d   : > { %2926 = vst [vmem:[%s4944_s11 + $0xd8] sm:$0xff] %v2859_v20  ;;  %v3911_v40 = vadd.f32 %v3879_v36, %v3743_v22  ;;  %v2746_v41 = vpop.f32.mrb[29].mxu0  ;;  %v3744_v42 = vpop.f32.mrb[30].mxu1 }
 0x20e   : > { %v2890_v56 = vadd.f32 %v2889_v4, %v2857_v35  ;;  %2924 = vst [vmem:[%s4944_s11 + $0xc8] sm:$0xff] %v2857_v35  ;;  %v3912_v57 = vadd.f32 %v2746_v41, %v1569_v37  ;;  %v2876_v21 = vadd.f32 %v2875_v23, %v2858_v11  ;;  %v3880_v58 = vpop.f32.mrb[30].mxu0  ;;  %v1572_v39 = vpop.f32.mrb[31].mxu1 }
 0x20f   : > { %v2830_v55 = vadd.f32 %v3911_v40, %v4937_v54  ;;  %v3913_v61 = vadd.f32 %v3880_v58, %v3744_v42  ;;  %v2749_v1 = vpop.f32.mrb[31].mxu0 }
 0x210   : > { %v2828_v9 = vadd.f32 %v3912_v57, %v4937_v54  ;;  %v3914_v10 = vadd.f32 %v2749_v1, %v1572_v39  ;;  %v2891_v53 = vadd.f32 %v2890_v56, %v2859_v20 }
 0x211   : > { %v2862_v3 = vmax.f32 %v2830_v55, 0.0  ;;  %v2831_v15 = vadd.f32 %v3913_v61, %v4937_v54 }
 0x212   : > { %v2860_v19 = vmax.f32 %v2828_v9, 0.0  ;;  %v2829_v26 = vadd.f32 %v3914_v10, %v4937_v54 }
 0x213   : > { %2929 = vst [vmem:[%s4944_s11 + $0xf0] sm:$0xff] %v2862_v3  ;;  %v2863_v27 = vmax.f32 %v2831_v15, 0.0 }
 0x214   : > { %v2877_v32 = vadd.f32 %v2876_v21, %v2860_v19  ;;  %2927 = vst [vmem:[%s4944_s11 + $0xe0] sm:$0xff] %v2860_v19  ;;  %v2861_v33 = vmax.f32 %v2829_v26, 0.0 }
 0x215   : > { %2930 = vst [vmem:[%s4944_s11 + $0xf8] sm:$0xff] %v2863_v27 }
 0x216   : > { %v2878_v38 = vadd.f32 %v2877_v32, %v2862_v3  ;;  %v2892_v48 = vadd.f32 %v2891_v53, %v2861_v33  ;;  %2928 = vst [vmem:[%s4944_s11 + $0xe8] sm:$0xff] %v2861_v33 }
 0x217   : > { %4209 = shalt.err (!%p4206_p3)
}
 0x218   : > { %s4210_s10 = scalar_lea.hbm %s5014_s23, 4096  ;;  %s4214_s13 = scalar_lea.hbm %s5112_s3, 8192 }
 0x219   : > { %p4211_p4 = scmp.ne.s32.totalorder %s5014_s23, %s4210_s10  ;;  %p4215_p9 = scmp.lt.u32.totalorder %s5014_s23, %s5112_s3 }
 0x21a   : > { %p4216_p10 = scmp.lt.u32.totalorder %s4214_s13, %s4210_s10  ;;  %p4218_p12 = scmp.lt.u32.totalorder %s4210_s10, %s5014_s23 }
 0x21b   : > { %p4212_p7 = pnand %p4211_p4, %p4359_p5 }
 0x21c   : > { %p4217_p11 = por %p4216_p10, %p4215_p9 }
 0x21d   : > { %p4213_p8 = pneg %p4212_p7 }
 0x21e   : > { %p4219_p13 = por %p4218_p12, %p4217_p11 }
 0x220   : > { %p4220_p0 = pnand %p4219_p13, %p4213_p8 }
 0x222   : > { %4223 = shalt.err (!%p4220_p0)
}
 0x223   : > { %s4293_s5 = smov 128   ;;  %s4294_s6 = smov 8   ;;  %v2895_v54 = vmul.f32 0.0625, %v2878_v38  ;;  %v2893_v49 = vadd.f32 %v2892_v48, %v2863_v27 }
 0x224   : > { %4150 = dma.vmem_to_hbm [thread:$0]  (%p4359_p5), %s5016_s14, 4096, %s5014_s23, %s2932_s30, %s4293_s5, %s4293_s5, %s4294_s6  }
 0x225   : > { %2897 = vst [vmem:[%s5022_s28] sm:$0xff] %v2895_v54  ;;  %v2896_v50 = vmul.f32 0.0625, %v2893_v49  ;;  %s5058_s10 = scalar_lea.hbm %s5113_s4, %s3421_s27  ;;  %s2937_s11 = scalar_lea.sflag [#allocation5], %s4932_s7 }
 0x226   : > { %s4224_s12 = scalar_lea.vmem %s5062_s29, 256  ;;  %s4295_s14 = smov [#allocation4]  }
 0x227   : > { %2898 = vst [vmem:[%s5022_s28 + $0x8] sm:$0xff] %v2896_v50  ;;  %p4225_p1 = scmp.ne.s32.totalorder %s5062_s29, %s4224_s12  ;;  %s4228_s19 = sshll.u32 %s4295_s14, 4  ;;  %s4229_s19 = int_to_ptr.vmem [resolvable:$false] %s4228_s19 }
 0x228   : > { %s4230_s23 = scalar_lea.vmem %s4229_s19, 512  ;;  %p4231_p4 = scmp.lt.s32.totalorder %s5062_s29, %s4229_s19 }
 0x229   : > { %p4226_p2 = pnand %p4225_p1, %p4359_p5  ;;  %p4232_p7 = scmp.lt.s32.totalorder %s4230_s23, %s4224_s12 }
 0x22b   : > { %p4227_p3 = pneg %p4226_p2  ;;  %p4233_p8 = por %p4232_p7, %p4231_p4 }
 0x22d   : > { %p4234_p9 = pnand %p4233_p8, %p4227_p3 }
 0x22f   : > { %4237 = shalt.err (!%p4234_p9)
}
 0x230   : > { %s4238_s27 = scalar_lea.hbm %s5058_s10, 256  ;;  %s4242_s13 = scalar_lea.hbm %s5113_s4, 512 }
 0x231   : > { %p4239_p10 = scmp.ne.s32.totalorder %s5058_s10, %s4238_s27  ;;  %p4243_p13 = scmp.lt.u32.totalorder %s5058_s10, %s5113_s4 }
 0x232   : > { %p4244_p0 = scmp.lt.u32.totalorder %s4242_s13, %s4238_s27  ;;  %p4246_p2 = scmp.lt.u32.totalorder %s4238_s27, %s5058_s10 }
 0x233   : > { %p4240_p11 = pnand %p4239_p10, %p4359_p5 }
 0x234   : > { %p4245_p1 = por %p4244_p0, %p4243_p13 }
 0x235   : > { %p4241_p12 = pneg %p4240_p11 }
 0x236   : > { %p4247_p3 = por %p4246_p2, %p4245_p1 }
 0x238   : > { %p4248_p4 = pnand %p4247_p3, %p4241_p12 }
 0x23a   : > { %4251 = shalt.err (!%p4248_p4)
}
 0x23b   : > { %4151 = dma.vmem_to_hbm [thread:$0]  (%p4359_p5), %s5062_s29, 256, %s5058_s10, %s2937_s11, %s4293_s5, %s4293_s5, %s4294_s6  }
 0x23c PF: > { %p4161_p7 = scmp.ge.s32.totalorder %s4290_s18, 2  ;;  %s2981_s8 = sand.u32 1, %s4278_s15  }
 0x23d   : > { %s2982_s9 = scalar_lea.sflag [#allocation3], %s2981_s8 }
 0x23e   : > { %p4155_p8 = pnand %p4161_p7, %p4363_p6 }
 0x240   : > { %4269 = dma.done.wait (!%p4155_p8), %s2982_s9, 4096  }
 0x241   : > { %4271 = vsyncadd (!%p4155_p8), %s2982_s9, 4294963200  ;;  %s2991_s25 = scalar_lea.sflag [#allocation5], %s2981_s8 }
 0x242   : > { %4273 = dma.done.wait (!%p4155_p8), %s2991_s25, 256  }
 0x243   : > { %4275 = vsyncadd (!%p4155_p8), %s2991_s25, 4294967040  ;;  %p18_p5 = scmp.ge.s32.totalorder %s4346_s21, 4   ;;  %s5116_s15 = smov %s4282_s16 }
 0x244   : > { %s5117_s16 = smov %s4286_s17  ;;  %s5118_s17 = smov %s4357_s24 }
 0x245   : > { %s5119_s18 = smov %s4346_s21  ;;  %20 = sbr.rel (!%p18_p5) target bundleno = 5 (0x5), region = 94 }
 0x24c   :  { %2996 = vsyncpa [#allocation3], 1 }
 0x24d   :  { %2998 = vsyncpa [#allocation3 + $0x1], 1 }
 0x24e   :  { %2999 = vsyncpa [#allocation5], 1 }
 0x24f   :  { %3001 = vsyncpa [#allocation5 + $0x1], 1 }

</bundles_post_ra>
